<compile_context>
chip_gen: v7x
topology: tpu7x:2x2x1
jax: 0.10.0
libtpu: 0.0.40
codegen_flags: <defaults>
</compile_context>

<pallas_src>
import functools

import jax
import jax.numpy as jnp
from jax import lax
from jax.experimental import pallas as pl
from jax.experimental.pallas import tpu as pltpu

BETA = 1.0
EPS = 1e-6
_LANES = 128
_MAX_SUB_TILE = 256      # sublane chunks per grid step (256 * 128 = 32768 rows)


def _cdiv(a, b):
    return -(-a // b)


def _smooth_l1(d):
    # torch.where(d < beta, 0.5*d*d/beta, d - 0.5*beta), beta = 1.0
    return jnp.where(d < BETA, 0.5 * d * d / BETA, d - 0.5 * BETA)


def _scan_min(keys, comps):
    """Lane-parallel min over a short list of (S,128) tiles; companion value is
    taken at the FIRST argmin (strict '<' keeps torch first-index tie rule)."""
    kb, cb = keys[0], comps[0]
    for k, c in zip(keys[1:], comps[1:]):
        upd = k < kb
        kb = jnp.where(upd, k, kb)
        cb = jnp.where(upd, c, cb)
    return kb, cb


def _scan_max(keys, comps):
    kb, cb = keys[0], comps[0]
    for k, c in zip(keys[1:], comps[1:]):
        upd = k > kb
        kb = jnp.where(upd, k, kb)
        cb = jnp.where(upd, c, cb)
    return kb, cb


def _bc_convex_giou_kernel(p_ref, t_ref, out_ref, *, n_rows):
    # p_ref: (2, 9, sub_tile, 128)   t_ref: (2, 4, sub_tile, 128)
    # out_ref: (3, 128) per-tile lane-dense partial sums [S, W, G]
    pid = pl.program_id(0)
    sub_tile = p_ref.shape[2]
    shape = (sub_tile, _LANES)

    # Load each point-row exactly once as a dense (sub_tile, 128) tile.
    px = [p_ref[0, i] for i in range(9)]
    py = [p_ref[1, i] for i in range(9)]
    tx = [t_ref[0, i] for i in range(4)]
    ty = [t_ref[1, i] for i in range(4)]

    # ---- extreme points (unrolled compare-select scans; pure VPU) ----------
    p_left_x, p_left_y = _scan_min(px, py)
    p_right_x, p_right_y = _scan_max(px, py)
    p_up_y, p_up_x = _scan_min(py, px)
    p_bottom_y, p_bottom_x = _scan_max(py, px)

    t_left_x, t_left_y = _scan_min(tx, ty)
    t_right_x, t_right_y = _scan_max(tx, ty)
    t_up_y, t_up_x = _scan_min(ty, tx)
    t_bottom_y, t_bottom_x = _scan_max(ty, tx)

    # ---- means (unrolled sums) ----------------------------------------------
    px_mean = sum(px) * (1.0 / 9.0)
    py_mean = sum(py) * (1.0 / 9.0)
    tx_mean = sum(tx) * 0.25
    ty_mean = sum(ty) * 0.25

    # ---- per-row smooth-L1 contributions (mean offset + extreme corners) ----
    s_row = (
        _smooth_l1(jnp.abs(px_mean - tx_mean))
        + _smooth_l1(jnp.abs(py_mean - ty_mean))
        + _smooth_l1(jnp.abs(p_left_x - t_left_x))
        + _smooth_l1(jnp.abs(p_left_y - t_left_y))
        + _smooth_l1(jnp.abs(p_up_x - t_up_x))
        + _smooth_l1(jnp.abs(p_up_y - t_up_y))
        + _smooth_l1(jnp.abs(p_right_x - t_right_x))
        + _smooth_l1(jnp.abs(p_right_y - t_right_y))
        + _smooth_l1(jnp.abs(p_bottom_x - t_bottom_x))
        + _smooth_l1(jnp.abs(p_bottom_y - t_bottom_y))
    )

    # ---- aspect-ratio weight -------------------------------------------------
    e1 = jnp.sqrt((tx[0] - tx[1]) ** 2 + (ty[0] - ty[1]) ** 2)
    e2 = jnp.sqrt((tx[1] - tx[2]) ** 2 + (ty[1] - ty[2]) ** 2)
    width = jnp.maximum(e1, e2)
    height = jnp.minimum(e1, e2)
    ratio = width / height
    w_row = jnp.exp(-0.25 * ratio)

    # ---- convex GIoU (per row), REUSING the extreme-point reductions --------
    # TODO(synk): exact convex-hull GIoU (mmcv `convex_giou`) is data-dependent
    # polygon clipping with no clean Pallas equivalent; approximated with
    # axis-aligned bounding-box GIoU of the two point sets.
    inter_w = jnp.maximum(
        jnp.minimum(p_right_x, t_right_x) - jnp.maximum(p_left_x, t_left_x), 0.0)
    inter_h = jnp.maximum(
        jnp.minimum(p_bottom_y, t_bottom_y) - jnp.maximum(p_up_y, t_up_y), 0.0)
    inter = inter_w * inter_h
    area_p = (p_right_x - p_left_x) * (p_bottom_y - p_up_y)
    area_t = (t_right_x - t_left_x) * (t_bottom_y - t_up_y)
    union = area_p + area_t - inter
    iou = inter / (union + EPS)
    enc_w = jnp.maximum(p_right_x, t_right_x) - jnp.minimum(p_left_x, t_left_x)
    enc_h = jnp.maximum(p_bottom_y, t_bottom_y) - jnp.minimum(p_up_y, t_up_y)
    enclose = enc_w * enc_h
    giou = iou - (enclose - union) / (enclose + EPS)

    g_row = (2.0 * w_row - 1.0) * giou

    # ---- per-tile lane-dense partial sums ------------------------------------
    def _write(s, w, g):
        out_ref[0:1, :] = jnp.sum(s, axis=0, keepdims=True)
        out_ref[1:2, :] = jnp.sum(w, axis=0, keepdims=True)
        out_ref[2:3, :] = jnp.sum(g, axis=0, keepdims=True)

    last = pl.num_programs(0) - 1

    @pl.when(pid != last)
    def _full_tile():
        _write(s_row, w_row, g_row)

    @pl.when(pid == last)
    def _masked_tile():
        # Only the final tile can contain padded rows; mask them out here
        # (where-select, not multiply, so padded-row NaNs never leak).
        sub = lax.broadcasted_iota(jnp.int32, shape, 0)
        lane = lax.broadcasted_iota(jnp.int32, shape, 1)
        row_idx = (pid * sub_tile + sub) * _LANES + lane
        valid = row_idx < n_rows
        zero = jnp.zeros(shape, jnp.float32)
        _write(jnp.where(valid, s_row, zero),
               jnp.where(valid, w_row, zero),
               jnp.where(valid, g_row, zero))


def bc_convex_giou_loss(pred, target, weight=None, reduction="mean",
                        avg_factor=None, loss_weight=1.0):
    """pred: (N, 18) float32, target: (N, 8) float32. Returns scalar loss."""
    # TODO(synk): per-element `weight`, avg_factor and reduction='none' paths
    # of the torch module are not implemented.
    assert weight is None, "weight path not implemented in this Pallas kernel"
    assert reduction in ("mean", "sum")
    del avg_factor, loss_weight  # loss_weight only scales the cached grad in torch

    pred = jnp.asarray(pred, jnp.float32)
    target = jnp.asarray(target, jnp.float32)
    n = pred.shape[0]
    assert n > 0

    # Balanced tiling: pad only by a handful of 128-row chunks, keep per-step
    # blocks contiguous, and cap at 32768 rows per grid step (VMEM-safe on
    # v5e/v6e/v7x while amortizing the ~0.35us per-step overhead).
    n_sub = _cdiv(n, _LANES)
    num_tiles = _cdiv(n_sub, _MAX_SUB_TILE)
    sub_tile = _cdiv(n_sub, num_tiles)
    n_pad = num_tiles * sub_tile * _LANES
    if n_pad != n:
        pred = jnp.pad(pred, ((0, n_pad - n), (0, 0)))
        target = jnp.pad(target, ((0, n_pad - n), (0, 0)))

    # Single-pass prep: de-interleave (x, y) AND lay rows out lane-dense with
    # the grid axis outermost, so every grid step reads one contiguous HBM slab.
    # TODO(synk): this transpose is still one extra HBM read+write per input;
    # fold into the producer (planar layout) to remove it entirely.
    p_planes = jnp.transpose(
        pred.reshape(num_tiles, sub_tile, _LANES, 9, 2), (0, 4, 3, 1, 2))
    t_planes = jnp.transpose(
        target.reshape(num_tiles, sub_tile, _LANES, 4, 2), (0, 4, 3, 1, 2))

    kernel = functools.partial(_bc_convex_giou_kernel, n_rows=n)
    partials = pl.pallas_call(
        kernel,
        grid=(num_tiles,),
        in_specs=[
            pl.BlockSpec((None, 2, 9, sub_tile, _LANES),
                         lambda i: (i, 0, 0, 0, 0)),
            pl.BlockSpec((None, 2, 4, sub_tile, _LANES),
                         lambda i: (i, 0, 0, 0, 0)),
        ],
        out_specs=pl.BlockSpec((None, 3, _LANES), lambda i: (i, 0, 0)),
        out_shape=jax.ShapeDtypeStruct((num_tiles, 3, _LANES), jnp.float32),
        compiler_params=pltpu.CompilerParams(
            dimension_semantics=("parallel",)),
    )(p_planes, t_planes)

    # Tiny epilogue in JAX: combine the three global sums.
    #   sum_r loss_r = W * (S / N) + N + G
    # with S = sum of per-row smooth-L1 terms, W = sum of per-row weights,
    # G = sum of (2*w_r - 1) * giou_r  (matches the torch broadcast math).
    totals = jnp.sum(partials, axis=(0, 2))          # (3,) -> [S, W, G]
    s_tot, w_tot, g_tot = totals[0], totals[1], totals[2]
    loss_sum = w_tot * (s_tot / n) + float(n) + g_tot

    if reduction == "mean":
        return loss_sum / n
    return loss_sum


class BCConvexGIoULoss:
    """JAX mirror of the PyTorch module (forward only)."""

    def __init__(self, reduction="mean", loss_weight=1.0):
        self.reduction = reduction
        self.loss_weight = loss_weight

    def __call__(self, pred, target, weight=None, avg_factor=None,
                 reduction_override=None):
        assert reduction_override in (None, "none", "mean", "sum")
        reduction = reduction_override if reduction_override else self.reduction
        return self.loss_weight * bc_convex_giou_loss(
            pred, target, weight=weight, reduction=reduction,
            avg_factor=avg_factor, loss_weight=self.loss_weight)


if __name__ == "__main__":
    key = jax.random.PRNGKey(0)
    k1, k2, k3 = jax.random.split(key, 3)
    N = 8
    # pred: 9 (x, y) point offsets per row; target: 4 (x, y) corners per row.
    pred = 4.0 * jax.random.normal(k1, (N, 18), dtype=jnp.float32)
    # Build a valid-ish quadrilateral target: center + rectangle corners.
    cx_cy = 2.0 * jax.random.normal(k2, (N, 1, 2), dtype=jnp.float32)
    wh = 2.0 + jnp.abs(jax.random.normal(k3, (N, 1, 2), dtype=jnp.float32)) * 3.0
    unit = jnp.array([[-0.5, -0.5], [0.5, -0.5], [0.5, 0.5], [-0.5, 0.5]],
                     dtype=jnp.float32)[None]                 # (1, 4, 2)
    target = (cx_cy + unit * wh).reshape(N, 8)

    loss_fn = BCConvexGIoULoss(reduction="mean", loss_weight=1.0)
    loss = loss_fn(pred, target)
    jax.block_until_ready(loss)
    assert loss.shape == () and jnp.isfinite(loss)
    print("KERNEL_OK")
</pallas_src>

<mosaic_0001>
module attributes {stable_mosaic.version = 11 : i64} {
  func.func @_bc_convex_giou_kernel(%arg0: i32, %arg1: memref<1x2x9x1x128xf32, #tpu.memory_space<vmem>>, %arg2: memref<1x2x4x1x128xf32, #tpu.memory_space<vmem>>, %arg3: memref<1x3x128xf32, #tpu.memory_space<vmem>>) attributes {dimension_semantics = [#tpu.dimension_semantics<parallel>], iteration_bounds = array<i64: 1>, scalar_prefetch = 0 : i64, scratch_operands = 0 : i64, tpu.core_type = #tpu.core_type<tc>, window_params = [{transform_indices = @transform_0, window_bounds = array<i64: 1, 2, 9, 1, 128>}, {transform_indices = @transform_1, window_bounds = array<i64: 1, 2, 4, 1, 128>}, {transform_indices = @transform_2, window_bounds = array<i64: 1, 3, 128>}]} {
    %c0 = arith.constant 0 : index
    %c0_0 = arith.constant 0 : index
    %c0_1 = arith.constant 0 : index
    %c0_2 = arith.constant 0 : index
    %c0_3 = arith.constant 0 : index
    %0 = vector.load %arg1[%c0, %c0_0, %c0_1, %c0_2, %c0_3] : memref<1x2x9x1x128xf32, #tpu.memory_space<vmem>>, vector<1x1x1x1x128xf32>
    %1 = vector.shape_cast %0 : vector<1x1x1x1x128xf32> to vector<1x128xf32>
    %c0_4 = arith.constant 0 : index
    %c0_5 = arith.constant 0 : index
    %c1 = arith.constant 1 : index
    %c0_6 = arith.constant 0 : index
    %c0_7 = arith.constant 0 : index
    %2 = vector.load %arg1[%c0_4, %c0_5, %c1, %c0_6, %c0_7] : memref<1x2x9x1x128xf32, #tpu.memory_space<vmem>>, vector<1x1x1x1x128xf32>
    %3 = vector.shape_cast %2 : vector<1x1x1x1x128xf32> to vector<1x128xf32>
    %c0_8 = arith.constant 0 : index
    %c0_9 = arith.constant 0 : index
    %c2 = arith.constant 2 : index
    %c0_10 = arith.constant 0 : index
    %c0_11 = arith.constant 0 : index
    %4 = vector.load %arg1[%c0_8, %c0_9, %c2, %c0_10, %c0_11] : memref<1x2x9x1x128xf32, #tpu.memory_space<vmem>>, vector<1x1x1x1x128xf32>
    %5 = vector.shape_cast %4 : vector<1x1x1x1x128xf32> to vector<1x128xf32>
    %c0_12 = arith.constant 0 : index
    %c0_13 = arith.constant 0 : index
    %c3 = arith.constant 3 : index
    %c0_14 = arith.constant 0 : index
    %c0_15 = arith.constant 0 : index
    %6 = vector.load %arg1[%c0_12, %c0_13, %c3, %c0_14, %c0_15] : memref<1x2x9x1x128xf32, #tpu.memory_space<vmem>>, vector<1x1x1x1x128xf32>
    %7 = vector.shape_cast %6 : vector<1x1x1x1x128xf32> to vector<1x128xf32>
    %c0_16 = arith.constant 0 : index
    %c0_17 = arith.constant 0 : index
    %c4 = arith.constant 4 : index
    %c0_18 = arith.constant 0 : index
    %c0_19 = arith.constant 0 : index
    %8 = vector.load %arg1[%c0_16, %c0_17, %c4, %c0_18, %c0_19] : memref<1x2x9x1x128xf32, #tpu.memory_space<vmem>>, vector<1x1x1x1x128xf32>
    %9 = vector.shape_cast %8 : vector<1x1x1x1x128xf32> to vector<1x128xf32>
    %c0_20 = arith.constant 0 : index
    %c0_21 = arith.constant 0 : index
    %c5 = arith.constant 5 : index
    %c0_22 = arith.constant 0 : index
    %c0_23 = arith.constant 0 : index
    %10 = vector.load %arg1[%c0_20, %c0_21, %c5, %c0_22, %c0_23] : memref<1x2x9x1x128xf32, #tpu.memory_space<vmem>>, vector<1x1x1x1x128xf32>
    %11 = vector.shape_cast %10 : vector<1x1x1x1x128xf32> to vector<1x128xf32>
    %c0_24 = arith.constant 0 : index
    %c0_25 = arith.constant 0 : index
    %c6 = arith.constant 6 : index
    %c0_26 = arith.constant 0 : index
    %c0_27 = arith.constant 0 : index
    %12 = vector.load %arg1[%c0_24, %c0_25, %c6, %c0_26, %c0_27] : memref<1x2x9x1x128xf32, #tpu.memory_space<vmem>>, vector<1x1x1x1x128xf32>
    %13 = vector.shape_cast %12 : vector<1x1x1x1x128xf32> to vector<1x128xf32>
    %c0_28 = arith.constant 0 : index
    %c0_29 = arith.constant 0 : index
    %c7 = arith.constant 7 : index
    %c0_30 = arith.constant 0 : index
    %c0_31 = arith.constant 0 : index
    %14 = vector.load %arg1[%c0_28, %c0_29, %c7, %c0_30, %c0_31] : memref<1x2x9x1x128xf32, #tpu.memory_space<vmem>>, vector<1x1x1x1x128xf32>
    %15 = vector.shape_cast %14 : vector<1x1x1x1x128xf32> to vector<1x128xf32>
    %c0_32 = arith.constant 0 : index
    %c0_33 = arith.constant 0 : index
    %c8 = arith.constant 8 : index
    %c0_34 = arith.constant 0 : index
    %c0_35 = arith.constant 0 : index
    %16 = vector.load %arg1[%c0_32, %c0_33, %c8, %c0_34, %c0_35] : memref<1x2x9x1x128xf32, #tpu.memory_space<vmem>>, vector<1x1x1x1x128xf32>
    %17 = vector.shape_cast %16 : vector<1x1x1x1x128xf32> to vector<1x128xf32>
    %c0_36 = arith.constant 0 : index
    %c1_37 = arith.constant 1 : index
    %c0_38 = arith.constant 0 : index
    %c0_39 = arith.constant 0 : index
    %c0_40 = arith.constant 0 : index
    %18 = vector.load %arg1[%c0_36, %c1_37, %c0_38, %c0_39, %c0_40] : memref<1x2x9x1x128xf32, #tpu.memory_space<vmem>>, vector<1x1x1x1x128xf32>
    %19 = vector.shape_cast %18 : vector<1x1x1x1x128xf32> to vector<1x128xf32>
    %c0_41 = arith.constant 0 : index
    %c1_42 = arith.constant 1 : index
    %c1_43 = arith.constant 1 : index
    %c0_44 = arith.constant 0 : index
    %c0_45 = arith.constant 0 : index
    %20 = vector.load %arg1[%c0_41, %c1_42, %c1_43, %c0_44, %c0_45] : memref<1x2x9x1x128xf32, #tpu.memory_space<vmem>>, vector<1x1x1x1x128xf32>
    %21 = vector.shape_cast %20 : vector<1x1x1x1x128xf32> to vector<1x128xf32>
    %c0_46 = arith.constant 0 : index
    %c1_47 = arith.constant 1 : index
    %c2_48 = arith.constant 2 : index
    %c0_49 = arith.constant 0 : index
    %c0_50 = arith.constant 0 : index
    %22 = vector.load %arg1[%c0_46, %c1_47, %c2_48, %c0_49, %c0_50] : memref<1x2x9x1x128xf32, #tpu.memory_space<vmem>>, vector<1x1x1x1x128xf32>
    %23 = vector.shape_cast %22 : vector<1x1x1x1x128xf32> to vector<1x128xf32>
    %c0_51 = arith.constant 0 : index
    %c1_52 = arith.constant 1 : index
    %c3_53 = arith.constant 3 : index
    %c0_54 = arith.constant 0 : index
    %c0_55 = arith.constant 0 : index
    %24 = vector.load %arg1[%c0_51, %c1_52, %c3_53, %c0_54, %c0_55] : memref<1x2x9x1x128xf32, #tpu.memory_space<vmem>>, vector<1x1x1x1x128xf32>
    %25 = vector.shape_cast %24 : vector<1x1x1x1x128xf32> to vector<1x128xf32>
    %c0_56 = arith.constant 0 : index
    %c1_57 = arith.constant 1 : index
    %c4_58 = arith.constant 4 : index
    %c0_59 = arith.constant 0 : index
    %c0_60 = arith.constant 0 : index
    %26 = vector.load %arg1[%c0_56, %c1_57, %c4_58, %c0_59, %c0_60] : memref<1x2x9x1x128xf32, #tpu.memory_space<vmem>>, vector<1x1x1x1x128xf32>
    %27 = vector.shape_cast %26 : vector<1x1x1x1x128xf32> to vector<1x128xf32>
    %c0_61 = arith.constant 0 : index
    %c1_62 = arith.constant 1 : index
    %c5_63 = arith.constant 5 : index
    %c0_64 = arith.constant 0 : index
    %c0_65 = arith.constant 0 : index
    %28 = vector.load %arg1[%c0_61, %c1_62, %c5_63, %c0_64, %c0_65] : memref<1x2x9x1x128xf32, #tpu.memory_space<vmem>>, vector<1x1x1x1x128xf32>
    %29 = vector.shape_cast %28 : vector<1x1x1x1x128xf32> to vector<1x128xf32>
    %c0_66 = arith.constant 0 : index
    %c1_67 = arith.constant 1 : index
    %c6_68 = arith.constant 6 : index
    %c0_69 = arith.constant 0 : index
    %c0_70 = arith.constant 0 : index
    %30 = vector.load %arg1[%c0_66, %c1_67, %c6_68, %c0_69, %c0_70] : memref<1x2x9x1x128xf32, #tpu.memory_space<vmem>>, vector<1x1x1x1x128xf32>
    %31 = vector.shape_cast %30 : vector<1x1x1x1x128xf32> to vector<1x128xf32>
    %c0_71 = arith.constant 0 : index
    %c1_72 = arith.constant 1 : index
    %c7_73 = arith.constant 7 : index
    %c0_74 = arith.constant 0 : index
    %c0_75 = arith.constant 0 : index
    %32 = vector.load %arg1[%c0_71, %c1_72, %c7_73, %c0_74, %c0_75] : memref<1x2x9x1x128xf32, #tpu.memory_space<vmem>>, vector<1x1x1x1x128xf32>
    %33 = vector.shape_cast %32 : vector<1x1x1x1x128xf32> to vector<1x128xf32>
    %c0_76 = arith.constant 0 : index
    %c1_77 = arith.constant 1 : index
    %c8_78 = arith.constant 8 : index
    %c0_79 = arith.constant 0 : index
    %c0_80 = arith.constant 0 : index
    %34 = vector.load %arg1[%c0_76, %c1_77, %c8_78, %c0_79, %c0_80] : memref<1x2x9x1x128xf32, #tpu.memory_space<vmem>>, vector<1x1x1x1x128xf32>
    %35 = vector.shape_cast %34 : vector<1x1x1x1x128xf32> to vector<1x128xf32>
    %c0_81 = arith.constant 0 : index
    %c0_82 = arith.constant 0 : index
    %c0_83 = arith.constant 0 : index
    %c0_84 = arith.constant 0 : index
    %c0_85 = arith.constant 0 : index
    %36 = vector.load %arg2[%c0_81, %c0_82, %c0_83, %c0_84, %c0_85] : memref<1x2x4x1x128xf32, #tpu.memory_space<vmem>>, vector<1x1x1x1x128xf32>
    %37 = vector.shape_cast %36 : vector<1x1x1x1x128xf32> to vector<1x128xf32>
    %c0_86 = arith.constant 0 : index
    %c0_87 = arith.constant 0 : index
    %c1_88 = arith.constant 1 : index
    %c0_89 = arith.constant 0 : index
    %c0_90 = arith.constant 0 : index
    %38 = vector.load %arg2[%c0_86, %c0_87, %c1_88, %c0_89, %c0_90] : memref<1x2x4x1x128xf32, #tpu.memory_space<vmem>>, vector<1x1x1x1x128xf32>
    %39 = vector.shape_cast %38 : vector<1x1x1x1x128xf32> to vector<1x128xf32>
    %c0_91 = arith.constant 0 : index
    %c0_92 = arith.constant 0 : index
    %c2_93 = arith.constant 2 : index
    %c0_94 = arith.constant 0 : index
    %c0_95 = arith.constant 0 : index
    %40 = vector.load %arg2[%c0_91, %c0_92, %c2_93, %c0_94, %c0_95] : memref<1x2x4x1x128xf32, #tpu.memory_space<vmem>>, vector<1x1x1x1x128xf32>
    %41 = vector.shape_cast %40 : vector<1x1x1x1x128xf32> to vector<1x128xf32>
    %c0_96 = arith.constant 0 : index
    %c0_97 = arith.constant 0 : index
    %c3_98 = arith.constant 3 : index
    %c0_99 = arith.constant 0 : index
    %c0_100 = arith.constant 0 : index
    %42 = vector.load %arg2[%c0_96, %c0_97, %c3_98, %c0_99, %c0_100] : memref<1x2x4x1x128xf32, #tpu.memory_space<vmem>>, vector<1x1x1x1x128xf32>
    %43 = vector.shape_cast %42 : vector<1x1x1x1x128xf32> to vector<1x128xf32>
    %c0_101 = arith.constant 0 : index
    %c1_102 = arith.constant 1 : index
    %c0_103 = arith.constant 0 : index
    %c0_104 = arith.constant 0 : index
    %c0_105 = arith.constant 0 : index
    %44 = vector.load %arg2[%c0_101, %c1_102, %c0_103, %c0_104, %c0_105] : memref<1x2x4x1x128xf32, #tpu.memory_space<vmem>>, vector<1x1x1x1x128xf32>
    %45 = vector.shape_cast %44 : vector<1x1x1x1x128xf32> to vector<1x128xf32>
    %c0_106 = arith.constant 0 : index
    %c1_107 = arith.constant 1 : index
    %c1_108 = arith.constant 1 : index
    %c0_109 = arith.constant 0 : index
    %c0_110 = arith.constant 0 : index
    %46 = vector.load %arg2[%c0_106, %c1_107, %c1_108, %c0_109, %c0_110] : memref<1x2x4x1x128xf32, #tpu.memory_space<vmem>>, vector<1x1x1x1x128xf32>
    %47 = vector.shape_cast %46 : vector<1x1x1x1x128xf32> to vector<1x128xf32>
    %c0_111 = arith.constant 0 : index
    %c1_112 = arith.constant 1 : index
    %c2_113 = arith.constant 2 : index
    %c0_114 = arith.constant 0 : index
    %c0_115 = arith.constant 0 : index
    %48 = vector.load %arg2[%c0_111, %c1_112, %c2_113, %c0_114, %c0_115] : memref<1x2x4x1x128xf32, #tpu.memory_space<vmem>>, vector<1x1x1x1x128xf32>
    %49 = vector.shape_cast %48 : vector<1x1x1x1x128xf32> to vector<1x128xf32>
    %c0_116 = arith.constant 0 : index
    %c1_117 = arith.constant 1 : index
    %c3_118 = arith.constant 3 : index
    %c0_119 = arith.constant 0 : index
    %c0_120 = arith.constant 0 : index
    %50 = vector.load %arg2[%c0_116, %c1_117, %c3_118, %c0_119, %c0_120] : memref<1x2x4x1x128xf32, #tpu.memory_space<vmem>>, vector<1x1x1x1x128xf32>
    %51 = vector.shape_cast %50 : vector<1x1x1x1x128xf32> to vector<1x128xf32>
    %52 = arith.cmpf olt, %3, %1 : vector<1x128xf32>
    %53 = arith.select %52, %3, %1 : vector<1x128xi1>, vector<1x128xf32>
    %54 = arith.select %52, %21, %19 : vector<1x128xi1>, vector<1x128xf32>
    %55 = arith.cmpf olt, %5, %53 : vector<1x128xf32>
    %56 = arith.select %55, %5, %53 : vector<1x128xi1>, vector<1x128xf32>
    %57 = arith.select %55, %23, %54 : vector<1x128xi1>, vector<1x128xf32>
    %58 = arith.cmpf olt, %7, %56 : vector<1x128xf32>
    %59 = arith.select %58, %7, %56 : vector<1x128xi1>, vector<1x128xf32>
    %60 = arith.select %58, %25, %57 : vector<1x128xi1>, vector<1x128xf32>
    %61 = arith.cmpf olt, %9, %59 : vector<1x128xf32>
    %62 = arith.select %61, %9, %59 : vector<1x128xi1>, vector<1x128xf32>
    %63 = arith.select %61, %27, %60 : vector<1x128xi1>, vector<1x128xf32>
    %64 = arith.cmpf olt, %11, %62 : vector<1x128xf32>
    %65 = arith.select %64, %11, %62 : vector<1x128xi1>, vector<1x128xf32>
    %66 = arith.select %64, %29, %63 : vector<1x128xi1>, vector<1x128xf32>
    %67 = arith.cmpf olt, %13, %65 : vector<1x128xf32>
    %68 = arith.select %67, %13, %65 : vector<1x128xi1>, vector<1x128xf32>
    %69 = arith.select %67, %31, %66 : vector<1x128xi1>, vector<1x128xf32>
    %70 = arith.cmpf olt, %15, %68 : vector<1x128xf32>
    %71 = arith.select %70, %15, %68 : vector<1x128xi1>, vector<1x128xf32>
    %72 = arith.select %70, %33, %69 : vector<1x128xi1>, vector<1x128xf32>
    %73 = arith.cmpf olt, %17, %71 : vector<1x128xf32>
    %74 = arith.select %73, %17, %71 : vector<1x128xi1>, vector<1x128xf32>
    %75 = arith.select %73, %35, %72 : vector<1x128xi1>, vector<1x128xf32>
    %76 = arith.cmpf ogt, %3, %1 : vector<1x128xf32>
    %77 = arith.select %76, %3, %1 : vector<1x128xi1>, vector<1x128xf32>
    %78 = arith.select %76, %21, %19 : vector<1x128xi1>, vector<1x128xf32>
    %79 = arith.cmpf ogt, %5, %77 : vector<1x128xf32>
    %80 = arith.select %79, %5, %77 : vector<1x128xi1>, vector<1x128xf32>
    %81 = arith.select %79, %23, %78 : vector<1x128xi1>, vector<1x128xf32>
    %82 = arith.cmpf ogt, %7, %80 : vector<1x128xf32>
    %83 = arith.select %82, %7, %80 : vector<1x128xi1>, vector<1x128xf32>
    %84 = arith.select %82, %25, %81 : vector<1x128xi1>, vector<1x128xf32>
    %85 = arith.cmpf ogt, %9, %83 : vector<1x128xf32>
    %86 = arith.select %85, %9, %83 : vector<1x128xi1>, vector<1x128xf32>
    %87 = arith.select %85, %27, %84 : vector<1x128xi1>, vector<1x128xf32>
    %88 = arith.cmpf ogt, %11, %86 : vector<1x128xf32>
    %89 = arith.select %88, %11, %86 : vector<1x128xi1>, vector<1x128xf32>
    %90 = arith.select %88, %29, %87 : vector<1x128xi1>, vector<1x128xf32>
    %91 = arith.cmpf ogt, %13, %89 : vector<1x128xf32>
    %92 = arith.select %91, %13, %89 : vector<1x128xi1>, vector<1x128xf32>
    %93 = arith.select %91, %31, %90 : vector<1x128xi1>, vector<1x128xf32>
    %94 = arith.cmpf ogt, %15, %92 : vector<1x128xf32>
    %95 = arith.select %94, %15, %92 : vector<1x128xi1>, vector<1x128xf32>
    %96 = arith.select %94, %33, %93 : vector<1x128xi1>, vector<1x128xf32>
    %97 = arith.cmpf ogt, %17, %95 : vector<1x128xf32>
    %98 = arith.select %97, %17, %95 : vector<1x128xi1>, vector<1x128xf32>
    %99 = arith.select %97, %35, %96 : vector<1x128xi1>, vector<1x128xf32>
    %100 = arith.cmpf olt, %21, %19 : vector<1x128xf32>
    %101 = arith.select %100, %21, %19 : vector<1x128xi1>, vector<1x128xf32>
    %102 = arith.select %100, %3, %1 : vector<1x128xi1>, vector<1x128xf32>
    %103 = arith.cmpf olt, %23, %101 : vector<1x128xf32>
    %104 = arith.select %103, %23, %101 : vector<1x128xi1>, vector<1x128xf32>
    %105 = arith.select %103, %5, %102 : vector<1x128xi1>, vector<1x128xf32>
    %106 = arith.cmpf olt, %25, %104 : vector<1x128xf32>
    %107 = arith.select %106, %25, %104 : vector<1x128xi1>, vector<1x128xf32>
    %108 = arith.select %106, %7, %105 : vector<1x128xi1>, vector<1x128xf32>
    %109 = arith.cmpf olt, %27, %107 : vector<1x128xf32>
    %110 = arith.select %109, %27, %107 : vector<1x128xi1>, vector<1x128xf32>
    %111 = arith.select %109, %9, %108 : vector<1x128xi1>, vector<1x128xf32>
    %112 = arith.cmpf olt, %29, %110 : vector<1x128xf32>
    %113 = arith.select %112, %29, %110 : vector<1x128xi1>, vector<1x128xf32>
    %114 = arith.select %112, %11, %111 : vector<1x128xi1>, vector<1x128xf32>
    %115 = arith.cmpf olt, %31, %113 : vector<1x128xf32>
    %116 = arith.select %115, %31, %113 : vector<1x128xi1>, vector<1x128xf32>
    %117 = arith.select %115, %13, %114 : vector<1x128xi1>, vector<1x128xf32>
    %118 = arith.cmpf olt, %33, %116 : vector<1x128xf32>
    %119 = arith.select %118, %33, %116 : vector<1x128xi1>, vector<1x128xf32>
    %120 = arith.select %118, %15, %117 : vector<1x128xi1>, vector<1x128xf32>
    %121 = arith.cmpf olt, %35, %119 : vector<1x128xf32>
    %122 = arith.select %121, %35, %119 : vector<1x128xi1>, vector<1x128xf32>
    %123 = arith.select %121, %17, %120 : vector<1x128xi1>, vector<1x128xf32>
    %124 = arith.cmpf ogt, %21, %19 : vector<1x128xf32>
    %125 = arith.select %124, %21, %19 : vector<1x128xi1>, vector<1x128xf32>
    %126 = arith.select %124, %3, %1 : vector<1x128xi1>, vector<1x128xf32>
    %127 = arith.cmpf ogt, %23, %125 : vector<1x128xf32>
    %128 = arith.select %127, %23, %125 : vector<1x128xi1>, vector<1x128xf32>
    %129 = arith.select %127, %5, %126 : vector<1x128xi1>, vector<1x128xf32>
    %130 = arith.cmpf ogt, %25, %128 : vector<1x128xf32>
    %131 = arith.select %130, %25, %128 : vector<1x128xi1>, vector<1x128xf32>
    %132 = arith.select %130, %7, %129 : vector<1x128xi1>, vector<1x128xf32>
    %133 = arith.cmpf ogt, %27, %131 : vector<1x128xf32>
    %134 = arith.select %133, %27, %131 : vector<1x128xi1>, vector<1x128xf32>
    %135 = arith.select %133, %9, %132 : vector<1x128xi1>, vector<1x128xf32>
    %136 = arith.cmpf ogt, %29, %134 : vector<1x128xf32>
    %137 = arith.select %136, %29, %134 : vector<1x128xi1>, vector<1x128xf32>
    %138 = arith.select %136, %11, %135 : vector<1x128xi1>, vector<1x128xf32>
    %139 = arith.cmpf ogt, %31, %137 : vector<1x128xf32>
    %140 = arith.select %139, %31, %137 : vector<1x128xi1>, vector<1x128xf32>
    %141 = arith.select %139, %13, %138 : vector<1x128xi1>, vector<1x128xf32>
    %142 = arith.cmpf ogt, %33, %140 : vector<1x128xf32>
    %143 = arith.select %142, %33, %140 : vector<1x128xi1>, vector<1x128xf32>
    %144 = arith.select %142, %15, %141 : vector<1x128xi1>, vector<1x128xf32>
    %145 = arith.cmpf ogt, %35, %143 : vector<1x128xf32>
    %146 = arith.select %145, %35, %143 : vector<1x128xi1>, vector<1x128xf32>
    %147 = arith.select %145, %17, %144 : vector<1x128xi1>, vector<1x128xf32>
    %148 = arith.cmpf olt, %39, %37 : vector<1x128xf32>
    %149 = arith.select %148, %39, %37 : vector<1x128xi1>, vector<1x128xf32>
    %150 = arith.select %148, %47, %45 : vector<1x128xi1>, vector<1x128xf32>
    %151 = arith.cmpf olt, %41, %149 : vector<1x128xf32>
    %152 = arith.select %151, %41, %149 : vector<1x128xi1>, vector<1x128xf32>
    %153 = arith.select %151, %49, %150 : vector<1x128xi1>, vector<1x128xf32>
    %154 = arith.cmpf olt, %43, %152 : vector<1x128xf32>
    %155 = arith.select %154, %43, %152 : vector<1x128xi1>, vector<1x128xf32>
    %156 = arith.select %154, %51, %153 : vector<1x128xi1>, vector<1x128xf32>
    %157 = arith.cmpf ogt, %39, %37 : vector<1x128xf32>
    %158 = arith.select %157, %39, %37 : vector<1x128xi1>, vector<1x128xf32>
    %159 = arith.select %157, %47, %45 : vector<1x128xi1>, vector<1x128xf32>
    %160 = arith.cmpf ogt, %41, %158 : vector<1x128xf32>
    %161 = arith.select %160, %41, %158 : vector<1x128xi1>, vector<1x128xf32>
    %162 = arith.select %160, %49, %159 : vector<1x128xi1>, vector<1x128xf32>
    %163 = arith.cmpf ogt, %43, %161 : vector<1x128xf32>
    %164 = arith.select %163, %43, %161 : vector<1x128xi1>, vector<1x128xf32>
    %165 = arith.select %163, %51, %162 : vector<1x128xi1>, vector<1x128xf32>
    %166 = arith.cmpf olt, %47, %45 : vector<1x128xf32>
    %167 = arith.select %166, %47, %45 : vector<1x128xi1>, vector<1x128xf32>
    %168 = arith.select %166, %39, %37 : vector<1x128xi1>, vector<1x128xf32>
    %169 = arith.cmpf olt, %49, %167 : vector<1x128xf32>
    %170 = arith.select %169, %49, %167 : vector<1x128xi1>, vector<1x128xf32>
    %171 = arith.select %169, %41, %168 : vector<1x128xi1>, vector<1x128xf32>
    %172 = arith.cmpf olt, %51, %170 : vector<1x128xf32>
    %173 = arith.select %172, %51, %170 : vector<1x128xi1>, vector<1x128xf32>
    %174 = arith.select %172, %43, %171 : vector<1x128xi1>, vector<1x128xf32>
    %175 = arith.cmpf ogt, %47, %45 : vector<1x128xf32>
    %176 = arith.select %175, %47, %45 : vector<1x128xi1>, vector<1x128xf32>
    %177 = arith.select %175, %39, %37 : vector<1x128xi1>, vector<1x128xf32>
    %178 = arith.cmpf ogt, %49, %176 : vector<1x128xf32>
    %179 = arith.select %178, %49, %176 : vector<1x128xi1>, vector<1x128xf32>
    %180 = arith.select %178, %41, %177 : vector<1x128xi1>, vector<1x128xf32>
    %181 = arith.cmpf ogt, %51, %179 : vector<1x128xf32>
    %182 = arith.select %181, %51, %179 : vector<1x128xi1>, vector<1x128xf32>
    %183 = arith.select %181, %43, %180 : vector<1x128xi1>, vector<1x128xf32>
    %cst = arith.constant 0.000000e+00 : f32
    %184 = vector.broadcast %cst : f32 to vector<1x128xf32>
    %185 = arith.addf %184, %1 : vector<1x128xf32>
    %186 = arith.addf %185, %3 : vector<1x128xf32>
    %187 = arith.addf %186, %5 : vector<1x128xf32>
    %188 = arith.addf %187, %7 : vector<1x128xf32>
    %189 = arith.addf %188, %9 : vector<1x128xf32>
    %190 = arith.addf %189, %11 : vector<1x128xf32>
    %191 = arith.addf %190, %13 : vector<1x128xf32>
    %192 = arith.addf %191, %15 : vector<1x128xf32>
    %193 = arith.addf %192, %17 : vector<1x128xf32>
    %cst_121 = arith.constant 0.111111112 : f32
    %194 = vector.broadcast %cst_121 : f32 to vector<1x128xf32>
    %195 = arith.mulf %193, %194 : vector<1x128xf32>
    %cst_122 = arith.constant 0.000000e+00 : f32
    %196 = vector.broadcast %cst_122 : f32 to vector<1x128xf32>
    %197 = arith.addf %196, %19 : vector<1x128xf32>
    %198 = arith.addf %197, %21 : vector<1x128xf32>
    %199 = arith.addf %198, %23 : vector<1x128xf32>
    %200 = arith.addf %199, %25 : vector<1x128xf32>
    %201 = arith.addf %200, %27 : vector<1x128xf32>
    %202 = arith.addf %201, %29 : vector<1x128xf32>
    %203 = arith.addf %202, %31 : vector<1x128xf32>
    %204 = arith.addf %203, %33 : vector<1x128xf32>
    %205 = arith.addf %204, %35 : vector<1x128xf32>
    %cst_123 = arith.constant 0.111111112 : f32
    %206 = vector.broadcast %cst_123 : f32 to vector<1x128xf32>
    %207 = arith.mulf %205, %206 : vector<1x128xf32>
    %cst_124 = arith.constant 0.000000e+00 : f32
    %208 = vector.broadcast %cst_124 : f32 to vector<1x128xf32>
    %209 = arith.addf %208, %37 : vector<1x128xf32>
    %210 = arith.addf %209, %39 : vector<1x128xf32>
    %211 = arith.addf %210, %41 : vector<1x128xf32>
    %212 = arith.addf %211, %43 : vector<1x128xf32>
    %cst_125 = arith.constant 2.500000e-01 : f32
    %213 = vector.broadcast %cst_125 : f32 to vector<1x128xf32>
    %214 = arith.mulf %212, %213 : vector<1x128xf32>
    %cst_126 = arith.constant 0.000000e+00 : f32
    %215 = vector.broadcast %cst_126 : f32 to vector<1x128xf32>
    %216 = arith.addf %215, %45 : vector<1x128xf32>
    %217 = arith.addf %216, %47 : vector<1x128xf32>
    %218 = arith.addf %217, %49 : vector<1x128xf32>
    %219 = arith.addf %218, %51 : vector<1x128xf32>
    %cst_127 = arith.constant 2.500000e-01 : f32
    %220 = vector.broadcast %cst_127 : f32 to vector<1x128xf32>
    %221 = arith.mulf %219, %220 : vector<1x128xf32>
    %222 = arith.subf %195, %214 : vector<1x128xf32>
    %223 = math.absf %222 : vector<1x128xf32>
    %cst_128 = arith.constant 1.000000e+00 : f32
    %224 = vector.broadcast %cst_128 : f32 to vector<1x128xf32>
    %225 = arith.cmpf olt, %223, %224 : vector<1x128xf32>
    %cst_129 = arith.constant 5.000000e-01 : f32
    %226 = vector.broadcast %cst_129 : f32 to vector<1x128xf32>
    %227 = arith.mulf %226, %223 : vector<1x128xf32>
    %228 = arith.mulf %227, %223 : vector<1x128xf32>
    %cst_130 = arith.constant 1.000000e+00 : f32
    %229 = vector.broadcast %cst_130 : f32 to vector<1x128xf32>
    %230 = arith.divf %228, %229 : vector<1x128xf32>
    %cst_131 = arith.constant 5.000000e-01 : f32
    %231 = vector.broadcast %cst_131 : f32 to vector<1x128xf32>
    %232 = arith.subf %223, %231 : vector<1x128xf32>
    %233 = arith.select %225, %230, %232 : vector<1x128xi1>, vector<1x128xf32>
    %234 = arith.subf %207, %221 : vector<1x128xf32>
    %235 = math.absf %234 : vector<1x128xf32>
    %cst_132 = arith.constant 1.000000e+00 : f32
    %236 = vector.broadcast %cst_132 : f32 to vector<1x128xf32>
    %237 = arith.cmpf olt, %235, %236 : vector<1x128xf32>
    %cst_133 = arith.constant 5.000000e-01 : f32
    %238 = vector.broadcast %cst_133 : f32 to vector<1x128xf32>
    %239 = arith.mulf %238, %235 : vector<1x128xf32>
    %240 = arith.mulf %239, %235 : vector<1x128xf32>
    %cst_134 = arith.constant 1.000000e+00 : f32
    %241 = vector.broadcast %cst_134 : f32 to vector<1x128xf32>
    %242 = arith.divf %240, %241 : vector<1x128xf32>
    %cst_135 = arith.constant 5.000000e-01 : f32
    %243 = vector.broadcast %cst_135 : f32 to vector<1x128xf32>
    %244 = arith.subf %235, %243 : vector<1x128xf32>
    %245 = arith.select %237, %242, %244 : vector<1x128xi1>, vector<1x128xf32>
    %246 = arith.addf %233, %245 : vector<1x128xf32>
    %247 = arith.subf %74, %155 : vector<1x128xf32>
    %248 = math.absf %247 : vector<1x128xf32>
    %cst_136 = arith.constant 1.000000e+00 : f32
    %249 = vector.broadcast %cst_136 : f32 to vector<1x128xf32>
    %250 = arith.cmpf olt, %248, %249 : vector<1x128xf32>
    %cst_137 = arith.constant 5.000000e-01 : f32
    %251 = vector.broadcast %cst_137 : f32 to vector<1x128xf32>
    %252 = arith.mulf %251, %248 : vector<1x128xf32>
    %253 = arith.mulf %252, %248 : vector<1x128xf32>
    %cst_138 = arith.constant 1.000000e+00 : f32
    %254 = vector.broadcast %cst_138 : f32 to vector<1x128xf32>
    %255 = arith.divf %253, %254 : vector<1x128xf32>
    %cst_139 = arith.constant 5.000000e-01 : f32
    %256 = vector.broadcast %cst_139 : f32 to vector<1x128xf32>
    %257 = arith.subf %248, %256 : vector<1x128xf32>
    %258 = arith.select %250, %255, %257 : vector<1x128xi1>, vector<1x128xf32>
    %259 = arith.addf %246, %258 : vector<1x128xf32>
    %260 = arith.subf %75, %156 : vector<1x128xf32>
    %261 = math.absf %260 : vector<1x128xf32>
    %cst_140 = arith.constant 1.000000e+00 : f32
    %262 = vector.broadcast %cst_140 : f32 to vector<1x128xf32>
    %263 = arith.cmpf olt, %261, %262 : vector<1x128xf32>
    %cst_141 = arith.constant 5.000000e-01 : f32
    %264 = vector.broadcast %cst_141 : f32 to vector<1x128xf32>
    %265 = arith.mulf %264, %261 : vector<1x128xf32>
    %266 = arith.mulf %265, %261 : vector<1x128xf32>
    %cst_142 = arith.constant 1.000000e+00 : f32
    %267 = vector.broadcast %cst_142 : f32 to vector<1x128xf32>
    %268 = arith.divf %266, %267 : vector<1x128xf32>
    %cst_143 = arith.constant 5.000000e-01 : f32
    %269 = vector.broadcast %cst_143 : f32 to vector<1x128xf32>
    %270 = arith.subf %261, %269 : vector<1x128xf32>
    %271 = arith.select %263, %268, %270 : vector<1x128xi1>, vector<1x128xf32>
    %272 = arith.addf %259, %271 : vector<1x128xf32>
    %273 = arith.subf %123, %174 : vector<1x128xf32>
    %274 = math.absf %273 : vector<1x128xf32>
    %cst_144 = arith.constant 1.000000e+00 : f32
    %275 = vector.broadcast %cst_144 : f32 to vector<1x128xf32>
    %276 = arith.cmpf olt, %274, %275 : vector<1x128xf32>
    %cst_145 = arith.constant 5.000000e-01 : f32
    %277 = vector.broadcast %cst_145 : f32 to vector<1x128xf32>
    %278 = arith.mulf %277, %274 : vector<1x128xf32>
    %279 = arith.mulf %278, %274 : vector<1x128xf32>
    %cst_146 = arith.constant 1.000000e+00 : f32
    %280 = vector.broadcast %cst_146 : f32 to vector<1x128xf32>
    %281 = arith.divf %279, %280 : vector<1x128xf32>
    %cst_147 = arith.constant 5.000000e-01 : f32
    %282 = vector.broadcast %cst_147 : f32 to vector<1x128xf32>
    %283 = arith.subf %274, %282 : vector<1x128xf32>
    %284 = arith.select %276, %281, %283 : vector<1x128xi1>, vector<1x128xf32>
    %285 = arith.addf %272, %284 : vector<1x128xf32>
    %286 = arith.subf %122, %173 : vector<1x128xf32>
    %287 = math.absf %286 : vector<1x128xf32>
    %cst_148 = arith.constant 1.000000e+00 : f32
    %288 = vector.broadcast %cst_148 : f32 to vector<1x128xf32>
    %289 = arith.cmpf olt, %287, %288 : vector<1x128xf32>
    %cst_149 = arith.constant 5.000000e-01 : f32
    %290 = vector.broadcast %cst_149 : f32 to vector<1x128xf32>
    %291 = arith.mulf %290, %287 : vector<1x128xf32>
    %292 = arith.mulf %291, %287 : vector<1x128xf32>
    %cst_150 = arith.constant 1.000000e+00 : f32
    %293 = vector.broadcast %cst_150 : f32 to vector<1x128xf32>
    %294 = arith.divf %292, %293 : vector<1x128xf32>
    %cst_151 = arith.constant 5.000000e-01 : f32
    %295 = vector.broadcast %cst_151 : f32 to vector<1x128xf32>
    %296 = arith.subf %287, %295 : vector<1x128xf32>
    %297 = arith.select %289, %294, %296 : vector<1x128xi1>, vector<1x128xf32>
    %298 = arith.addf %285, %297 : vector<1x128xf32>
    %299 = arith.subf %98, %164 : vector<1x128xf32>
    %300 = math.absf %299 : vector<1x128xf32>
    %cst_152 = arith.constant 1.000000e+00 : f32
    %301 = vector.broadcast %cst_152 : f32 to vector<1x128xf32>
    %302 = arith.cmpf olt, %300, %301 : vector<1x128xf32>
    %cst_153 = arith.constant 5.000000e-01 : f32
    %303 = vector.broadcast %cst_153 : f32 to vector<1x128xf32>
    %304 = arith.mulf %303, %300 : vector<1x128xf32>
    %305 = arith.mulf %304, %300 : vector<1x128xf32>
    %cst_154 = arith.constant 1.000000e+00 : f32
    %306 = vector.broadcast %cst_154 : f32 to vector<1x128xf32>
    %307 = arith.divf %305, %306 : vector<1x128xf32>
    %cst_155 = arith.constant 5.000000e-01 : f32
    %308 = vector.broadcast %cst_155 : f32 to vector<1x128xf32>
    %309 = arith.subf %300, %308 : vector<1x128xf32>
    %310 = arith.select %302, %307, %309 : vector<1x128xi1>, vector<1x128xf32>
    %311 = arith.addf %298, %310 : vector<1x128xf32>
    %312 = arith.subf %99, %165 : vector<1x128xf32>
    %313 = math.absf %312 : vector<1x128xf32>
    %cst_156 = arith.constant 1.000000e+00 : f32
    %314 = vector.broadcast %cst_156 : f32 to vector<1x128xf32>
    %315 = arith.cmpf olt, %313, %314 : vector<1x128xf32>
    %cst_157 = arith.constant 5.000000e-01 : f32
    %316 = vector.broadcast %cst_157 : f32 to vector<1x128xf32>
    %317 = arith.mulf %316, %313 : vector<1x128xf32>
    %318 = arith.mulf %317, %313 : vector<1x128xf32>
    %cst_158 = arith.constant 1.000000e+00 : f32
    %319 = vector.broadcast %cst_158 : f32 to vector<1x128xf32>
    %320 = arith.divf %318, %319 : vector<1x128xf32>
    %cst_159 = arith.constant 5.000000e-01 : f32
    %321 = vector.broadcast %cst_159 : f32 to vector<1x128xf32>
    %322 = arith.subf %313, %321 : vector<1x128xf32>
    %323 = arith.select %315, %320, %322 : vector<1x128xi1>, vector<1x128xf32>
    %324 = arith.addf %311, %323 : vector<1x128xf32>
    %325 = arith.subf %147, %183 : vector<1x128xf32>
    %326 = math.absf %325 : vector<1x128xf32>
    %cst_160 = arith.constant 1.000000e+00 : f32
    %327 = vector.broadcast %cst_160 : f32 to vector<1x128xf32>
    %328 = arith.cmpf olt, %326, %327 : vector<1x128xf32>
    %cst_161 = arith.constant 5.000000e-01 : f32
    %329 = vector.broadcast %cst_161 : f32 to vector<1x128xf32>
    %330 = arith.mulf %329, %326 : vector<1x128xf32>
    %331 = arith.mulf %330, %326 : vector<1x128xf32>
    %cst_162 = arith.constant 1.000000e+00 : f32
    %332 = vector.broadcast %cst_162 : f32 to vector<1x128xf32>
    %333 = arith.divf %331, %332 : vector<1x128xf32>
    %cst_163 = arith.constant 5.000000e-01 : f32
    %334 = vector.broadcast %cst_163 : f32 to vector<1x128xf32>
    %335 = arith.subf %326, %334 : vector<1x128xf32>
    %336 = arith.select %328, %333, %335 : vector<1x128xi1>, vector<1x128xf32>
    %337 = arith.addf %324, %336 : vector<1x128xf32>
    %338 = arith.subf %146, %182 : vector<1x128xf32>
    %339 = math.absf %338 : vector<1x128xf32>
    %cst_164 = arith.constant 1.000000e+00 : f32
    %340 = vector.broadcast %cst_164 : f32 to vector<1x128xf32>
    %341 = arith.cmpf olt, %339, %340 : vector<1x128xf32>
    %cst_165 = arith.constant 5.000000e-01 : f32
    %342 = vector.broadcast %cst_165 : f32 to vector<1x128xf32>
    %343 = arith.mulf %342, %339 : vector<1x128xf32>
    %344 = arith.mulf %343, %339 : vector<1x128xf32>
    %cst_166 = arith.constant 1.000000e+00 : f32
    %345 = vector.broadcast %cst_166 : f32 to vector<1x128xf32>
    %346 = arith.divf %344, %345 : vector<1x128xf32>
    %cst_167 = arith.constant 5.000000e-01 : f32
    %347 = vector.broadcast %cst_167 : f32 to vector<1x128xf32>
    %348 = arith.subf %339, %347 : vector<1x128xf32>
    %349 = arith.select %341, %346, %348 : vector<1x128xi1>, vector<1x128xf32>
    %350 = arith.addf %337, %349 : vector<1x128xf32>
    %351 = arith.subf %37, %39 : vector<1x128xf32>
    %352 = arith.mulf %351, %351 : vector<1x128xf32>
    %353 = arith.subf %45, %47 : vector<1x128xf32>
    %354 = arith.mulf %353, %353 : vector<1x128xf32>
    %355 = arith.addf %352, %354 : vector<1x128xf32>
    %356 = math.sqrt %355 : vector<1x128xf32>
    %357 = arith.subf %39, %41 : vector<1x128xf32>
    %358 = arith.mulf %357, %357 : vector<1x128xf32>
    %359 = arith.subf %47, %49 : vector<1x128xf32>
    %360 = arith.mulf %359, %359 : vector<1x128xf32>
    %361 = arith.addf %358, %360 : vector<1x128xf32>
    %362 = math.sqrt %361 : vector<1x128xf32>
    %363 = arith.maximumf %356, %362 : vector<1x128xf32>
    %364 = arith.minimumf %356, %362 : vector<1x128xf32>
    %365 = arith.divf %363, %364 : vector<1x128xf32>
    %cst_168 = arith.constant -2.500000e-01 : f32
    %366 = vector.broadcast %cst_168 : f32 to vector<1x128xf32>
    %367 = arith.mulf %366, %365 : vector<1x128xf32>
    %368 = math.exp %367 : vector<1x128xf32>
    %369 = arith.minimumf %98, %164 : vector<1x128xf32>
    %370 = arith.maximumf %74, %155 : vector<1x128xf32>
    %371 = arith.subf %369, %370 : vector<1x128xf32>
    %cst_169 = arith.constant 0.000000e+00 : f32
    %372 = vector.broadcast %cst_169 : f32 to vector<1x128xf32>
    %373 = arith.maximumf %371, %372 : vector<1x128xf32>
    %374 = arith.minimumf %146, %182 : vector<1x128xf32>
    %375 = arith.maximumf %122, %173 : vector<1x128xf32>
    %376 = arith.subf %374, %375 : vector<1x128xf32>
    %cst_170 = arith.constant 0.000000e+00 : f32
    %377 = vector.broadcast %cst_170 : f32 to vector<1x128xf32>
    %378 = arith.maximumf %376, %377 : vector<1x128xf32>
    %379 = arith.mulf %373, %378 : vector<1x128xf32>
    %380 = arith.subf %98, %74 : vector<1x128xf32>
    %381 = arith.subf %146, %122 : vector<1x128xf32>
    %382 = arith.mulf %380, %381 : vector<1x128xf32>
    %383 = arith.subf %164, %155 : vector<1x128xf32>
    %384 = arith.subf %182, %173 : vector<1x128xf32>
    %385 = arith.mulf %383, %384 : vector<1x128xf32>
    %386 = arith.addf %382, %385 : vector<1x128xf32>
    %387 = arith.subf %386, %379 : vector<1x128xf32>
    %cst_171 = arith.constant 9.99999997E-7 : f32
    %388 = vector.broadcast %cst_171 : f32 to vector<1x128xf32>
    %389 = arith.addf %387, %388 : vector<1x128xf32>
    %390 = arith.divf %379, %389 : vector<1x128xf32>
    %391 = arith.maximumf %98, %164 : vector<1x128xf32>
    %392 = arith.minimumf %74, %155 : vector<1x128xf32>
    %393 = arith.subf %391, %392 : vector<1x128xf32>
    %394 = arith.maximumf %146, %182 : vector<1x128xf32>
    %395 = arith.minimumf %122, %173 : vector<1x128xf32>
    %396 = arith.subf %394, %395 : vector<1x128xf32>
    %397 = arith.mulf %393, %396 : vector<1x128xf32>
    %398 = arith.subf %397, %387 : vector<1x128xf32>
    %cst_172 = arith.constant 9.99999997E-7 : f32
    %399 = vector.broadcast %cst_172 : f32 to vector<1x128xf32>
    %400 = arith.addf %397, %399 : vector<1x128xf32>
    %401 = arith.divf %398, %400 : vector<1x128xf32>
    %402 = arith.subf %390, %401 : vector<1x128xf32>
    %cst_173 = arith.constant 2.000000e+00 : f32
    %403 = vector.broadcast %cst_173 : f32 to vector<1x128xf32>
    %404 = arith.mulf %403, %368 : vector<1x128xf32>
    %cst_174 = arith.constant 1.000000e+00 : f32
    %405 = vector.broadcast %cst_174 : f32 to vector<1x128xf32>
    %406 = arith.subf %404, %405 : vector<1x128xf32>
    %407 = arith.mulf %406, %402 : vector<1x128xf32>
    %c0_i32 = arith.constant 0 : i32
    %408 = arith.cmpi ne, %arg0, %c0_i32 : i32
    %409 = arith.extui %408 : i1 to i32
    %c0_i32_175 = arith.constant 0 : i32
    %410 = arith.cmpi ne, %409, %c0_i32_175 : i32
    scf.if %410 {
      %cst_178 = arith.constant dense<0.000000e+00> : vector<128xf32>
      %414 = vector.multi_reduction <add>, %350, %cst_178 [0] : vector<1x128xf32> to vector<128xf32>
      %415 = vector.shape_cast %414 : vector<128xf32> to vector<1x128xf32>
      %c0_179 = arith.constant 0 : index
      %c0_180 = arith.constant 0 : index
      %c0_181 = arith.constant 0 : index
      %416 = vector.load %arg3[%c0_179, %c0_180, %c0_181] : memref<1x3x128xf32, #tpu.memory_space<vmem>>, vector<1x1x128xf32>
      %417 = vector.shape_cast %416 : vector<1x1x128xf32> to vector<1x128xf32>
      %418 = vector.shape_cast %415 : vector<1x128xf32> to vector<1x1x128xf32>
      tpu.vector_store %arg3[%c0_179, %c0_180, %c0_181], %418 {strides = array<i32>} : memref<1x3x128xf32, #tpu.memory_space<vmem>>, vector<1x1x128xf32>,
      %cst_182 = arith.constant dense<0.000000e+00> : vector<128xf32>
      %419 = vector.multi_reduction <add>, %368, %cst_182 [0] : vector<1x128xf32> to vector<128xf32>
      %420 = vector.shape_cast %419 : vector<128xf32> to vector<1x128xf32>
      %c0_183 = arith.constant 0 : index
      %c1_184 = arith.constant 1 : index
      %c0_185 = arith.constant 0 : index
      %421 = vector.load %arg3[%c0_183, %c1_184, %c0_185] : memref<1x3x128xf32, #tpu.memory_space<vmem>>, vector<1x1x128xf32>
      %422 = vector.shape_cast %421 : vector<1x1x128xf32> to vector<1x128xf32>
      %423 = vector.shape_cast %420 : vector<1x128xf32> to vector<1x1x128xf32>
      tpu.vector_store %arg3[%c0_183, %c1_184, %c0_185], %423 {strides = array<i32>} : memref<1x3x128xf32, #tpu.memory_space<vmem>>, vector<1x1x128xf32>,
      %cst_186 = arith.constant dense<0.000000e+00> : vector<128xf32>
      %424 = vector.multi_reduction <add>, %407, %cst_186 [0] : vector<1x128xf32> to vector<128xf32>
      %425 = vector.shape_cast %424 : vector<128xf32> to vector<1x128xf32>
      %c0_187 = arith.constant 0 : index
      %c2_188 = arith.constant 2 : index
      %c0_189 = arith.constant 0 : index
      %426 = vector.load %arg3[%c0_187, %c2_188, %c0_189] : memref<1x3x128xf32, #tpu.memory_space<vmem>>, vector<1x1x128xf32>
      %427 = vector.shape_cast %426 : vector<1x1x128xf32> to vector<1x128xf32>
      %428 = vector.shape_cast %425 : vector<1x128xf32> to vector<1x1x128xf32>
      tpu.vector_store %arg3[%c0_187, %c2_188, %c0_189], %428 {strides = array<i32>} : memref<1x3x128xf32, #tpu.memory_space<vmem>>, vector<1x1x128xf32>,
    } else {
    }
    %c0_i32_176 = arith.constant 0 : i32
    %411 = arith.cmpi eq, %arg0, %c0_i32_176 : i32
    %412 = arith.extui %411 : i1 to i32
    %c0_i32_177 = arith.constant 0 : i32
    %413 = arith.cmpi ne, %412, %c0_i32_177 : i32
    scf.if %413 {
      %414 = tpu.iota {dimensions = array<i32: 0>} : vector<1x128xi32>
      %415 = tpu.iota {dimensions = array<i32: 1>} : vector<1x128xi32>
      %c1_i32 = arith.constant 1 : i32
      %416 = arith.muli %arg0, %c1_i32 : i32
      %417 = vector.broadcast %416 : i32 to vector<1x128xi32>
      %418 = arith.addi %417, %414 : vector<1x128xi32>
      %c128_i32 = arith.constant 128 : i32
      %419 = vector.broadcast %c128_i32 : i32 to vector<1x128xi32>
      %420 = arith.muli %418, %419 : vector<1x128xi32>
      %421 = arith.addi %420, %415 : vector<1x128xi32>
      %c8_i32 = arith.constant 8 : i32
      %422 = vector.broadcast %c8_i32 : i32 to vector<1x128xi32>
      %423 = arith.cmpi slt, %421, %422 : vector<1x128xi32>
      %cst_178 = arith.constant 0.000000e+00 : f32
      %424 = vector.broadcast %cst_178 : f32 to vector<1x128xf32>
      %425 = arith.select %423, %350, %424 : vector<1x128xi1>, vector<1x128xf32>
      %426 = arith.select %423, %368, %424 : vector<1x128xi1>, vector<1x128xf32>
      %427 = arith.select %423, %407, %424 : vector<1x128xi1>, vector<1x128xf32>
      %cst_179 = arith.constant dense<0.000000e+00> : vector<128xf32>
      %428 = vector.multi_reduction <add>, %425, %cst_179 [0] : vector<1x128xf32> to vector<128xf32>
      %429 = vector.shape_cast %428 : vector<128xf32> to vector<1x128xf32>
      %c0_180 = arith.constant 0 : index
      %c0_181 = arith.constant 0 : index
      %c0_182 = arith.constant 0 : index
      %430 = vector.load %arg3[%c0_180, %c0_181, %c0_182] : memref<1x3x128xf32, #tpu.memory_space<vmem>>, vector<1x1x128xf32>
      %431 = vector.shape_cast %430 : vector<1x1x128xf32> to vector<1x128xf32>
      %432 = vector.shape_cast %429 : vector<1x128xf32> to vector<1x1x128xf32>
      tpu.vector_store %arg3[%c0_180, %c0_181, %c0_182], %432 {strides = array<i32>} : memref<1x3x128xf32, #tpu.memory_space<vmem>>, vector<1x1x128xf32>,
      %cst_183 = arith.constant dense<0.000000e+00> : vector<128xf32>
      %433 = vector.multi_reduction <add>, %426, %cst_183 [0] : vector<1x128xf32> to vector<128xf32>
      %434 = vector.shape_cast %433 : vector<128xf32> to vector<1x128xf32>
      %c0_184 = arith.constant 0 : index
      %c1_185 = arith.constant 1 : index
      %c0_186 = arith.constant 0 : index
      %435 = vector.load %arg3[%c0_184, %c1_185, %c0_186] : memref<1x3x128xf32, #tpu.memory_space<vmem>>, vector<1x1x128xf32>
      %436 = vector.shape_cast %435 : vector<1x1x128xf32> to vector<1x128xf32>
      %437 = vector.shape_cast %434 : vector<1x128xf32> to vector<1x1x128xf32>
      tpu.vector_store %arg3[%c0_184, %c1_185, %c0_186], %437 {strides = array<i32>} : memref<1x3x128xf32, #tpu.memory_space<vmem>>, vector<1x1x128xf32>,
      %cst_187 = arith.constant dense<0.000000e+00> : vector<128xf32>
      %438 = vector.multi_reduction <add>, %427, %cst_187 [0] : vector<1x128xf32> to vector<128xf32>
      %439 = vector.shape_cast %438 : vector<128xf32> to vector<1x128xf32>
      %c0_188 = arith.constant 0 : index
      %c2_189 = arith.constant 2 : index
      %c0_190 = arith.constant 0 : index
      %440 = vector.load %arg3[%c0_188, %c2_189, %c0_190] : memref<1x3x128xf32, #tpu.memory_space<vmem>>, vector<1x1x128xf32>
      %441 = vector.shape_cast %440 : vector<1x1x128xf32> to vector<1x128xf32>
      %442 = vector.shape_cast %439 : vector<1x128xf32> to vector<1x1x128xf32>
      tpu.vector_store %arg3[%c0_188, %c2_189, %c0_190], %442 {strides = array<i32>} : memref<1x3x128xf32, #tpu.memory_space<vmem>>, vector<1x1x128xf32>,
    } else {
    }
    return
  }
  func.func @transform_0(%arg0: i32) -> (i32, i32, i32, i32, i32) {
    %c0_i32 = arith.constant 0 : i32
    %c0_i32_0 = arith.constant 0 : i32
    %c0_i32_1 = arith.constant 0 : i32
    %c0_i32_2 = arith.constant 0 : i32
    %c0_i32_3 = arith.constant 0 : i32
    return %arg0, %c0_i32, %c0_i32_0, %c0_i32_1, %c0_i32_2 : i32, i32, i32, i32, i32
  }
  func.func @transform_1(%arg0: i32) -> (i32, i32, i32, i32, i32) {
    %c0_i32 = arith.constant 0 : i32
    %c0_i32_0 = arith.constant 0 : i32
    %c0_i32_1 = arith.constant 0 : i32
    %c0_i32_2 = arith.constant 0 : i32
    %c0_i32_3 = arith.constant 0 : i32
    return %arg0, %c0_i32, %c0_i32_0, %c0_i32_1, %c0_i32_2 : i32, i32, i32, i32, i32
  }
  func.func @transform_2(%arg0: i32) -> (i32, i32, i32) {
    %c0_i32 = arith.constant 0 : i32
    %c0_i32_0 = arith.constant 0 : i32
    %c0_i32_1 = arith.constant 0 : i32
    return %arg0, %c0_i32, %c0_i32_0 : i32, i32, i32
  }
}

</mosaic_0001>

<bundles_post_ra>
// kernel: tpu_custom_call.1
= control target key start
LH: loop header
LB: loop body
LE: loop exit
PB: predicated region body
PF: predicated region fallthrough
CT: control target
= control target key end

     0   :  { %7 = vsyncpa [#allocation3], 0  ;;  %s1071_s0 = inlined_call_operand.hbm [shape: f32[1,2,9,1,128], index: 0, kind: input, shape index: {}]   ;;  %s1072_s1 = inlined_call_operand.hbm [shape: f32[1,2,4,1,128], index: 1, kind: input, shape index: {}]   ;;  %s1073_s2 = inlined_call_operand.vmem [shape: f32[1,3,128], index: 2, kind: output, shape index: {}]  }
   0x1   :  { %8 = vsyncpa [#allocation5], 0  ;;  %s509_s9 = smov [#allocation2]   ;;  %s461_s13 = scalar_lea.hbm %s1071_s0, 288 }
   0x2   :  { %s14_s10 = sshll.u32 %s509_s9, 4  ;;  %p462_p0 = scmp.ne.s32.totalorder %s1071_s0, %s461_s13  ;;  %s15_s10 = int_to_ptr.vmem [resolvable:$true] %s14_s10 }
   0x3   :  { %p465_p1 = scmp.lt.u32.totalorder %s461_s13, %s1071_s0 }
   0x5   :  { %p467_p2 = pnand %p465_p1, %p462_p0 }
   0x7   :  { %470 = shalt.err (!%p467_p2)
}
   0x8   :  { %s471_s18 = scalar_lea.vmem %s15_s10, 288  ;;  %p476_p4 = scmp.lt.s32.totalorder %s15_s10, %s15_s10 }
   0x9   :  { %p472_p3 = scmp.ne.s32.totalorder %s15_s10, %s471_s18  ;;  %p477_p5 = scmp.lt.s32.totalorder %s471_s18, %s471_s18 }
   0xb   :  { %p478_p6 = por %p477_p5, %p476_p4 }
   0xd   :  { %p479_p7 = pnand %p478_p6, %p472_p3 }
   0xf   :  { %482 = shalt.err (!%p479_p7)
}
  0x10   :  { %s510_s19 = smov 16   ;;  %s511_s20 = smov 1  }
  0x11   :  { %20 = dma.hbm_to_vmem [thread:$0]  %s1071_s0, 288, %s15_s10, [#allocation3], %s510_s19, %s510_s19, %s511_s20  }
  0x12   :  { %s512_s23 = smov [#allocation4]   ;;  %s483_s27 = scalar_lea.hbm %s1072_s1, 128 }
  0x13   :  { %s26_s24 = sshll.u32 %s512_s23, 4  ;;  %p484_p8 = scmp.ne.s32.totalorder %s1072_s1, %s483_s27  ;;  %s27_s24 = int_to_ptr.vmem [resolvable:$true] %s26_s24 }
  0x14   :  { %p487_p9 = scmp.lt.u32.totalorder %s483_s27, %s1072_s1 }
  0x16   :  { %p489_p10 = pnand %p487_p9, %p484_p8 }
  0x18   :  { %492 = shalt.err (!%p489_p10)
}
  0x19   :  { %s493_s4 = scalar_lea.vmem %s27_s24, 128  ;;  %p498_p12 = scmp.lt.s32.totalorder %s27_s24, %s27_s24 }
  0x1a   :  { %p494_p11 = scmp.ne.s32.totalorder %s27_s24, %s493_s4  ;;  %p499_p13 = scmp.lt.s32.totalorder %s493_s4, %s493_s4 }
  0x1c   :  { %p500_p0 = por %p499_p13, %p498_p12 }
  0x1e   :  { %p501_p1 = pnand %p500_p0, %p494_p11 }
  0x20   :  { %504 = shalt.err (!%p501_p1)
}
  0x21   :  { %32 = dma.hbm_to_vmem [thread:$0]  %s1072_s1, 128, %s27_s24, [#allocation5], %s510_s19, %s510_s19, %s511_s20  }
  0x22   :  { %505 = dma.done.wait [#allocation3], 288  }
  0x23   :  { %506 = vsyncadd [#allocation3], 4294967008 }
  0x24   :  { %507 = dma.done.wait [#allocation5], 128  }
  0x25   :  { %508 = vsyncadd [#allocation5], 4294967168  ;;  %v552_v0 = vld [vmem:[#allocation2] sm:$0x1]  ;;  %v554_v1 = vld [vmem:[#allocation2 + $0x1] sm:$0x1]  ;;  %v410_v25 = vlaneseq }
  0x26   :  { %v556_v2 = vld [vmem:[#allocation2 + $0x2] sm:$0x1]  ;;  %vm89_vm0 = vcmp.lt.f32.partialorder %v554_v1, %v552_v0  ;;  %vm113_vm1 = vcmp.gt.f32.partialorder %v554_v1, %v552_v0  ;;  %v562_v3 = vld [vmem:[#allocation2 + $0x3] sm:$0x1]  ;;  %v573_v6 = vld [vmem:[#allocation2 + $0x4] sm:$0x1]  ;;  %v222_v39 = vadd.f32 %v554_v1, %v552_v0 }
  0x27   :  { %v90_v4 = vsel %vm89_vm0, %v554_v1, %v552_v0  ;;  %v114_v5 = vsel %vm113_vm1, %v554_v1, %v552_v0  ;;  %v575_v7 = vld [vmem:[#allocation2 + $0x9] sm:$0x1]  ;;  %v577_v8 = vld [vmem:[#allocation2 + $0xa] sm:$0x1]  ;;  %v587_v11 = vld [vmem:[#allocation2 + $0x5] sm:$0x1] }
  0x28   :  { %vm92_vm2 = vcmp.lt.f32.partialorder %v556_v2, %v90_v4  ;;  %vm116_vm3 = vcmp.gt.f32.partialorder %v556_v2, %v114_v5  ;;  %v91_v12 = vsel %vm89_vm0, %v577_v8, %v575_v7  ;;  %v115_v15 = vsel %vm113_vm1, %v577_v8, %v575_v7  ;;  %v606_v16 = vld [vmem:[#allocation2 + $0xb] sm:$0x1]  ;;  %v627_v22 = vld [vmem:[#allocation2 + $0x6] sm:$0x1]  ;;  %v629_v23 = vld [vmem:[#allocation2 + $0xc] sm:$0x1] }
  0x29   :  { %v93_v9 = vsel %vm92_vm2, %v556_v2, %v90_v4  ;;  %v117_v10 = vsel %vm116_vm3, %v556_v2, %v114_v5  ;;  %vm137_vm8 = vcmp.lt.f32.partialorder %v577_v8, %v575_v7  ;;  %v94_v19 = vsel %vm92_vm2, %v606_v16, %v91_v12  ;;  %v654_v31 = vld [vmem:[#allocation2 + $0xd] sm:$0x1]  ;;  %v668_v35 = vld [vmem:[#allocation4] sm:$0x1]  ;;  %v670_v36 = vld [vmem:[#allocation4 + $0x1] sm:$0x1] }
  0x2a   :  { %vm95_vm4 = vcmp.lt.f32.partialorder %v562_v3, %v93_v9  ;;  %vm119_vm5 = vcmp.gt.f32.partialorder %v562_v3, %v117_v10  ;;  %v138_v20 = vsel %vm137_vm8, %v577_v8, %v575_v7  ;;  %v118_v21 = vsel %vm116_vm3, %v606_v16, %v115_v15  ;;  %v681_v40 = vld [vmem:[#allocation2 + $0x7] sm:$0x1]  ;;  %v683_v41 = vld [vmem:[#allocation2 + $0xe] sm:$0x1]  ;;  %v706_v47 = vld [vmem:[#allocation2 + $0xf] sm:$0x1] }
  0x2b   :  { %v96_v13 = vsel %vm95_vm4, %v562_v3, %v93_v9  ;;  %v120_v14 = vsel %vm119_vm5, %v562_v3, %v117_v10  ;;  %vm140_vm11 = vcmp.lt.f32.partialorder %v606_v16, %v138_v20  ;;  %vm161_vm12 = vcmp.gt.f32.partialorder %v577_v8, %v575_v7  ;;  %v728_v53 = vld [vmem:[#allocation2 + $0x10] sm:$0x1]  ;;  %v740_v57 = vld [vmem:[#allocation4 + $0x2] sm:$0x1]  ;;  %v750_v60 = vld [vmem:[#allocation2 + $0x8] sm:$0x1] }
  0x2c   :  { %vm98_vm6 = vcmp.lt.f32.partialorder %v573_v6, %v96_v13  ;;  %vm122_vm7 = vcmp.gt.f32.partialorder %v573_v6, %v120_v14  ;;  %v97_v26 = vsel %vm95_vm4, %v629_v23, %v94_v19  ;;  %v121_v27 = vsel %vm119_vm5, %v629_v23, %v118_v21  ;;  %v770_v4 = vld [vmem:[#allocation4 + $0x4] sm:$0x1]  ;;  %v772_v5 = vld [vmem:[#allocation4 + $0x5] sm:$0x1]  ;;  %v797_v19 = vld [vmem:[#allocation2 + $0x11] sm:$0x1] }
  0x2d   :  { %v99_v17 = vsel %vm98_vm6, %v573_v6, %v96_v13  ;;  %v123_v18 = vsel %vm122_vm7, %v573_v6, %v120_v14  ;;  %v139_v29 = vsel %vm137_vm8, %v554_v1, %v552_v0  ;;  %v141_v30 = vsel %vm140_vm11, %v606_v16, %v138_v20  ;;  %v785_v14 = vld [vmem:[#allocation4 + $0x3] sm:$0x1] }
  0x2e   :  { %vm101_vm9 = vcmp.lt.f32.partialorder %v587_v11, %v99_v17  ;;  %vm125_vm10 = vcmp.gt.f32.partialorder %v587_v11, %v123_v18  ;;  %v162_v32 = vsel %vm161_vm12, %v577_v8, %v575_v7  ;;  %v100_v33 = vsel %vm98_vm6, %v654_v31, %v97_v26 }
  0x2f   :  { %v102_v24 = vsel %vm101_vm9, %v587_v11, %v99_v17  ;;  %v126_v28 = vsel %vm125_vm10, %v587_v11, %v123_v18  ;;  %vm143_vm14 = vcmp.lt.f32.partialorder %v629_v23, %v141_v30  ;;  %v666_v34 = vshrl.u32 %v410_v25, 7 }
  0x30   :  { %vm104_vm13 = vcmp.lt.f32.partialorder %v627_v22, %v102_v24  ;;  %v124_v37 = vsel %vm122_vm7, %v654_v31, %v121_v27  ;;  %vm128_vm15 = vcmp.gt.f32.partialorder %v627_v22, %v126_v28  ;;  %v142_v38 = vsel %vm140_vm11, %v556_v2, %v139_v29 }
  0x31   :  { %v105_v42 = vsel %vm104_vm13, %v627_v22, %v102_v24  ;;  %v144_v43 = vsel %vm143_vm14, %v629_v23, %v141_v30  ;;  %vm164_vm0 = vcmp.gt.f32.partialorder %v606_v16, %v162_v32  ;;  %vm185_vm1 = vcmp.lt.f32.partialorder %v670_v36, %v668_v35 }
  0x32   :  { %v103_v44 = vsel %vm101_vm9, %v683_v41, %v100_v33  ;;  %vm146_vm2 = vcmp.lt.f32.partialorder %v654_v31, %v144_v43  ;;  %v163_v45 = vsel %vm161_vm12, %v554_v1, %v552_v0  ;;  %v165_v46 = vsel %vm164_vm0, %v606_v16, %v162_v32 }
  0x33   :  { %v129_v48 = vsel %vm128_vm15, %v627_v22, %v126_v28  ;;  %v145_v49 = vsel %vm143_vm14, %v562_v3, %v142_v38  ;;  %v147_v50 = vsel %vm146_vm2, %v654_v31, %v144_v43  ;;  %vm167_vm3 = vcmp.gt.f32.partialorder %v629_v23, %v165_v46 }
  0x34   :  { %vm107_vm4 = vcmp.lt.f32.partialorder %v681_v40, %v105_v42  ;;  %vm149_vm5 = vcmp.lt.f32.partialorder %v683_v41, %v147_v50  ;;  %v168_v51 = vsel %vm167_vm3, %v629_v23, %v165_v46  ;;  %v186_v52 = vsel %vm185_vm1, %v670_v36, %v668_v35 }
  0x35   :  { %v127_v54 = vsel %vm125_vm10, %v683_v41, %v124_v37  ;;  %v150_v55 = vsel %vm149_vm5, %v683_v41, %v147_v50  ;;  %v166_v56 = vsel %vm164_vm0, %v556_v2, %v163_v45  ;;  %vm170_vm6 = vcmp.gt.f32.partialorder %v654_v31, %v168_v51  ;;  %v842_v37 = vld [vmem:[#allocation4 + $0x7] sm:$0x1] }
  0x36   :  { %vm131_vm7 = vcmp.gt.f32.partialorder %v681_v40, %v129_v48  ;;  %v148_v58 = vsel %vm146_vm2, %v573_v6, %v145_v49  ;;  %vm152_vm8 = vcmp.lt.f32.partialorder %v706_v47, %v150_v55  ;;  %v171_v59 = vsel %vm170_vm6, %v654_v31, %v168_v51 }
  0x37   :  { %v108_v61 = vsel %vm107_vm4, %v681_v40, %v105_v42  ;;  %v153_v62 = vsel %vm152_vm8, %v706_v47, %v150_v55  ;;  %vm173_vm9 = vcmp.gt.f32.partialorder %v683_v41, %v171_v59  ;;  %vm188_vm10 = vcmp.lt.f32.partialorder %v740_v57, %v186_v52 }
  0x38   :  { %v106_v63 = vsel %vm104_vm13, %v706_v47, %v103_v44  ;;  %vm155_vm11 = vcmp.lt.f32.partialorder %v728_v53, %v153_v62  ;;  %v169_v0 = vsel %vm167_vm3, %v562_v3, %v166_v56  ;;  %v174_v1 = vsel %vm173_vm9, %v683_v41, %v171_v59 }
  0x39   :  { %v130_v9 = vsel %vm128_vm15, %v706_v47, %v127_v54  ;;  %v132_v10 = vsel %vm131_vm7, %v681_v40, %v129_v48  ;;  %v151_v12 = vsel %vm149_vm5, %v587_v11, %v148_v58  ;;  %v783_v13 = vand.u32 127, %v410_v25  ;;  %v809_v25 = vld [vmem:[#allocation4 + $0x6] sm:$0x1] }
  0x3a   :  { %vm110_vm12 = vcmp.lt.f32.partialorder %v750_v60, %v108_v61  ;;  %v187_v15 = vsel %vm185_vm1, %v772_v5, %v770_v4  ;;  %v189_v17 = vsel %vm188_vm10, %v740_v57, %v186_v52  ;;  %v416_v18 = vmul.u32 128, %v666_v34 }
  0x3b   :  { %v109_v20 = vsel %vm107_vm4, %v728_v53, %v106_v63  ;;  %v156_v21 = vsel %vm155_vm11, %v728_v53, %v153_v62  ;;  %v172_v24 = vsel %vm170_vm6, %v573_v6, %v169_v0  ;;  %vm176_vm13 = vcmp.gt.f32.partialorder %v706_v47, %v174_v1 }
  0x3c   :  { %v133_v26 = vsel %vm131_vm7, %v728_v53, %v130_v9  ;;  %vm134_vm14 = vcmp.gt.f32.partialorder %v750_v60, %v132_v10  ;;  %v154_v27 = vsel %vm152_vm8, %v627_v22, %v151_v12  ;;  %v223_v28 = vadd.f32 %v222_v39, %v556_v2 }
  0x3d   :  { %v822_v29 = vsel %vm110_vm12, %v750_v60, %v108_v61  ;;  %v190_v30 = vsel %vm188_vm10, %v809_v25, %v187_v15  ;;  %vm191_vm15 = vcmp.lt.f32.partialorder %v785_v14, %v189_v17  ;;  %vm203_vm0 = vcmp.lt.f32.partialorder %v772_v5, %v770_v4 }
  0x3e   :  { %v833_v32 = vsel %vm110_vm12, %v797_v19, %v109_v20  ;;  %vm158_vm1 = vcmp.lt.f32.partialorder %v797_v19, %v156_v21  ;;  %v175_v2 = vsel %vm173_vm9, %v587_v11, %v172_v24  ;;  %v177_v33 = vsel %vm176_vm13, %v706_v47, %v174_v1 }
  0x3f   :  { %v845_v38 = vsel %vm134_vm14, %v750_v60, %v132_v10  ;;  %v848_v39 = vsel %vm134_vm14, %v797_v19, %v133_v26  ;;  %v157_v42 = vsel %vm155_vm11, %v681_v40, %v154_v27  ;;  %v204_v43 = vsel %vm203_vm0, %v772_v5, %v770_v4 }
  0x40   :  { %v859_v44 = vsel %vm191_vm15, %v785_v14, %v189_v17  ;;  %v193_v45 = vsel %vm191_vm15, %v842_v37, %v190_v30  ;;  %vm194_vm2 = vcmp.gt.f32.partialorder %v670_v36, %v668_v35  ;;  %v224_v46 = vadd.f32 %v223_v28, %v562_v3 }
  0x41   :  { %v868_v48 = vsel %vm158_vm1, %v797_v19, %v156_v21  ;;  %v178_v49 = vsel %vm176_vm13, %v627_v22, %v175_v2  ;;  %vm179_vm3 = vcmp.gt.f32.partialorder %v728_v53, %v177_v33  ;;  %v232_v50 = vadd.f32 %v577_v8, %v575_v7 }
  0x42   :  { %v160_v51 = vsel %vm158_vm1, %v750_v60, %v157_v42  ;;  %vm206_vm4 = vcmp.lt.f32.partialorder %v809_v25, %v204_v43  ;;  %vm212_vm5 = vcmp.gt.f32.partialorder %v772_v5, %v770_v4  ;;  %v225_v3 = vadd.f32 %v224_v46, %v573_v6 }
  0x43   :  { %v195_v52 = vsel %vm194_vm2, %v670_v36, %v668_v35  ;;  %v205_v7 = vsel %vm203_vm0, %v670_v36, %v668_v35  ;;  %v233_v8 = vadd.f32 %v232_v50, %v606_v16  ;;  %v242_v54 = vadd.f32 %v670_v36, %v668_v35 }
  0x44   :  { %v180_v6 = vsel %vm179_vm3, %v728_v53, %v177_v33  ;;  %v226_v55 = vadd.f32 %v225_v3, %v587_v11  ;;  %v247_v56 = vadd.f32 %v772_v5, %v770_v4  ;;  %v266_v58 = vsub.f32 %v822_v29, %v859_v44 }
  0x45   :  { %v207_v59 = vsel %vm206_vm4, %v809_v25, %v204_v43  ;;  %v213_v16 = vsel %vm212_vm5, %v772_v5, %v770_v4  ;;  %v234_v61 = vadd.f32 %v233_v8, %v629_v23  ;;  %v243_v11 = vadd.f32 %v242_v54, %v740_v57 }
  0x46   :  { %v181_v62 = vsel %vm179_vm3, %v681_v40, %v178_v49  ;;  %vm197_vm6 = vcmp.gt.f32.partialorder %v740_v57, %v195_v52  ;;  %v208_v63 = vsel %vm206_vm4, %v740_v57, %v205_v7  ;;  %v227_v0 = vadd.f32 %v226_v55, %v627_v22 }
  0x47   :  { %v235_v1 = vadd.f32 %v234_v61, %v654_v31  ;;  %v244_v9 = vadd.f32 %v243_v11, %v785_v14  ;;  %v248_v23 = vadd.f32 %v247_v56, %v809_v25  ;;  %v267_v10 = vand.u32 2147483647, %v266_v58 }
  0x48   :  { %v196_v12 = vsel %vm194_vm2, %v772_v5, %v770_v4  ;;  %vm209_vm7 = vcmp.lt.f32.partialorder %v842_v37, %v207_v59  ;;  %vm215_vm8 = vcmp.gt.f32.partialorder %v809_v25, %v213_v16  ;;  %v228_v15 = vadd.f32 %v227_v0, %v681_v40 }
  0x49   :  { %vm182_vm9 = vcmp.gt.f32.partialorder %v797_v19, %v180_v6  ;;  %v211_v22 = vsel %vm209_vm7, %v785_v14, %v208_v63  ;;  %v236_v31 = vadd.f32 %v235_v1, %v683_v41  ;;  %v274_v17 = vsub.f32 %v833_v32, %v193_v45 }
  0x4a   :  { %v198_v20 = vsel %vm197_vm6, %v740_v57, %v195_v52  ;;  %v214_v40 = vsel %vm212_vm5, %v670_v36, %v668_v35  ;;  %v229_v21 = vadd.f32 %v228_v15, %v750_v60  ;;  %v245_v24 = vmul.f32 0.25, %v244_v9 }
  0x4b   :  { %v216_v26 = vsel %vm215_vm8, %v809_v25, %v213_v16  ;;  %v237_v41 = vadd.f32 %v236_v31, %v706_v47  ;;  %v249_v27 = vadd.f32 %v248_v23, %v842_v37  ;;  %v269_v28 = vmul.f32 0.5, %v267_v10 }
  0x4c   :  { %v956_v30 = vsel %vm182_vm9, %v797_v19, %v180_v6  ;;  %v199_v32 = vsel %vm197_vm6, %v809_v25, %v196_v12  ;;  %v230_v2 = vmul.f32 0.11111111, %v229_v21  ;;  %v282_v33 = vsub.f32 %v160_v51, %v211_v22 }
  0x4d   :  { %v184_v42 = vsel %vm182_vm9, %v750_v60, %v181_v62  ;;  %vm200_vm10 = vcmp.gt.f32.partialorder %v785_v14, %v198_v20  ;;  %v238_v47 = vadd.f32 %v237_v41, %v728_v53  ;;  %v966_v43 = vand.u32 2147483647, %v274_v17 }
  0x4e   :  { %v971_v45 = vsel %vm209_vm7, %v842_v37, %v207_v59  ;;  %v217_v46 = vsel %vm215_vm8, %v740_v57, %v214_v40  ;;  %vm218_vm11 = vcmp.gt.f32.partialorder %v842_v37, %v216_v26  ;;  %v251_v49 = vsub.f32 %v230_v2, %v245_v24 }
  0x4f   :  { %v239_v60 = vadd.f32 %v238_v47, %v797_v19  ;;  %v250_v50 = vmul.f32 0.25, %v249_v27  ;;  %v270_v51 = vmul.f32 %v269_v28, %v267_v10  ;;  %v436_v3 = vadd.f32 -0.5, %v267_v10 }
  0x50   :  { %v252_v53 = vand.u32 2147483647, %v251_v49  ;;  %vm268_vm12 = vcmp.lt.f32.partialorder %v267_v10, 1.0  ;;  %v283_v52 = vand.u32 2147483647, %v282_v33  ;;  %v290_v7 = vsub.f32 %v868_v48, %v971_v45 }
  0x51   :  { %v983_v8 = vsel %vm200_vm10, %v785_v14, %v198_v20  ;;  %v202_v54 = vsel %vm200_vm10, %v842_v37, %v199_v32  ;;  %v240_v6 = vmul.f32 0.11111111, %v239_v60  ;;  %v277_v19 = vmul.f32 0.5, %v966_v43 }
  0x52   :  { %v990_v55 = vsel %vm218_vm11, %v842_v37, %v216_v26  ;;  %v220_v56 = vsel %vm218_vm11, %v785_v14, %v217_v46  ;;  %v254_v58 = vmul.f32 0.5, %v252_v53  ;;  %vm276_vm13 = vcmp.lt.f32.partialorder %v966_v43, 1.0 }
  0x53   :  { %v258_v59 = vsub.f32 %v240_v6, %v250_v50  ;;  %v272_v16 = vsel %vm268_vm12, %v270_v51, %v436_v3  ;;  %v437_v61 = vadd.f32 -0.5, %v966_v43  ;;  %v298_v11 = vsub.f32 %v845_v38, %v983_v8 }
  0x54   :  { %vm284_vm14 = vcmp.lt.f32.partialorder %v283_v52, 1.0  ;;  %v285_v62 = vmul.f32 0.5, %v283_v52  ;;  %v291_v63 = vand.u32 2147483647, %v290_v7  ;;  %v306_v0 = vsub.f32 %v848_v39, %v202_v54 }
  0x55   :  { %v255_v1 = vmul.f32 %v254_v58, %v252_v53  ;;  %v434_v37 = vadd.f32 -0.5, %v252_v53  ;;  %v259_v9 = vand.u32 2147483647, %v258_v59  ;;  %v278_v14 = vmul.f32 %v277_v19, %v966_v43 }
  0x56   :  { %vm253_vm15 = vcmp.lt.f32.partialorder %v252_v53, 1.0  ;;  %v314_v23 = vsub.f32 %v184_v42, %v220_v56  ;;  %v330_v10 = vsub.f32 %v668_v35, %v670_v36  ;;  %v332_v12 = vsub.f32 %v770_v4, %v772_v5 }
  0x57   :  { %v261_v15 = vmul.f32 0.5, %v259_v9  ;;  %v435_v22 = vadd.f32 -0.5, %v259_v9  ;;  %v299_v31 = vand.u32 2147483647, %v298_v11  ;;  %v322_v17 = vsub.f32 %v956_v30, %v990_v55 }
  0x58   :  { %vm260_vm0 = vcmp.lt.f32.partialorder %v259_v9, 1.0  ;;  %v438_v39 = vadd.f32 -0.5, %v283_v52  ;;  %v293_v20 = vmul.f32 0.5, %v291_v63  ;;  %v307_v40 = vand.u32 2147483647, %v306_v0 }
  0x59   :  { %v257_v21 = vsel %vm253_vm15, %v255_v1, %v434_v37  ;;  %v262_v24 = vmul.f32 %v261_v15, %v259_v9  ;;  %v331_v26 = vmul.f32 %v330_v10, %v330_v10  ;;  %v333_v41 = vmul.f32 %v332_v12, %v332_v12 }
  0x5a   :  { %v286_v27 = vmul.f32 %v285_v62, %v283_v52  ;;  %v315_v28 = vand.u32 2147483647, %v314_v23  ;;  %v342_v35 = vsub.f32 %v670_v36, %v740_v57  ;;  %v344_v4 = vsub.f32 %v772_v5, %v809_v25 }
  0x5b   :  { %v264_v32 = vsel %vm260_vm0, %v262_v24, %v435_v22  ;;  %v439_v2 = vadd.f32 -0.5, %v291_v63  ;;  %v301_v33 = vmul.f32 0.5, %v299_v31  ;;  %v323_v42 = vand.u32 2147483647, %v322_v17 }
  0x5c   :  { %v265_v47 = vadd.f32 %v264_v32, %v257_v21  ;;  %v294_v46 = vmul.f32 %v293_v20, %v291_v63  ;;  %v1009_v49 = vadd.f32 %v333_v41, %v331_v26  ;;  %v343_v60 = vmul.f32 %v342_v35, %v342_v35 }
  0x5d   :  { %v280_v50 = vsel %vm276_vm13, %v278_v14, %v437_v61  ;;  %vm292_vm1 = vcmp.lt.f32.partialorder %v291_v63, 1.0  ;;  %v309_v51 = vmul.f32 0.5, %v307_v40  ;;  %v345_v3 = vmul.f32 %v344_v4, %v344_v4 }
  0x5e   :  { %v273_v53 = vadd.f32 %v272_v16, %v265_v47  ;;  %v288_v36 = vsel %vm284_vm14, %v286_v27, %v438_v39  ;;  %v317_v57 = vmul.f32 0.5, %v315_v28  ;;  %449 = vrsqrt.f32 %v1009_v49 }
  0x5f   :  { %v302_v5 = vmul.f32 %v301_v33, %v299_v31  ;;  %v440_v25 = vadd.f32 -0.5, %v299_v31  ;;  %v325_v7 = vmul.f32 0.5, %v323_v42  ;;  %v346_v54 = vadd.f32 %v345_v3, %v343_v60 }
  0x60   :  { %v281_v6 = vadd.f32 %v280_v50, %v273_v53  ;;  %v296_v19 = vsel %vm292_vm1, %v294_v46, %v439_v2  ;;  %vm300_vm2 = vcmp.lt.f32.partialorder %v299_v31, 1.0  ;;  %vm308_vm3 = vcmp.lt.f32.partialorder %v307_v40, 1.0 }
  0x61   :  { %v310_v56 = vmul.f32 %v309_v51, %v307_v40  ;;  %v441_v43 = vadd.f32 -0.5, %v307_v40  ;;  %v442_v58 = vadd.f32 -0.5, %v315_v28  ;;  %451 = vrsqrt.f32 %v346_v54 }
  0x62   :  { %v289_v59 = vadd.f32 %v288_v36, %v281_v6  ;;  %v318_v61 = vmul.f32 %v317_v57, %v315_v28  ;;  %v361_v52 = vmin.f32 %v845_v38, %v983_v8  ;;  %v362_v16 = vmax.f32 %v822_v29, %v859_v44 }
  0x63   :  { %v304_v11 = vsel %vm300_vm2, %v302_v5, %v440_v25  ;;  %vm316_vm4 = vcmp.lt.f32.partialorder %v315_v28, 1.0  ;;  %v326_v62 = vmul.f32 %v325_v7, %v323_v42  ;;  %v443_v63 = vadd.f32 -0.5, %v323_v42 }
  0x64   :  { %v297_v0 = vadd.f32 %v296_v19, %v289_v59  ;;  %vm324_vm5 = vcmp.lt.f32.partialorder %v323_v42, 1.0  ;;  %v312_v1 = vsel %vm308_vm3, %v310_v56, %v441_v43  ;;  %v365_v37 = vmin.f32 %v956_v30, %v990_v55 }
  0x65   :  { %v366_v9 = vmax.f32 %v868_v48, %v971_v45  ;;  %v320_v23 = vsel %vm316_vm4, %v318_v61, %v442_v58  ;;  %v363_v10 = vsub.f32 %v361_v52, %v362_v16  ;;  %v1026_v12 = vadd.s32 %v416_v18, %v783_v13 }
  0x66   :  { %v305_v14 = vadd.f32 %v304_v11, %v297_v0  ;;  %v328_v15 = vsel %vm324_vm5, %v326_v62, %v443_v63  ;;  %vm337_vm6 = vcmp.eq.f32.partialorder %v1009_v49, inf  ;;  %vm339_vm7 = vcmp.eq.f32.partialorder %v1009_v49, 0.0 }
  0x67   :  { %v340_v22 = vand.u32 2147483648, %v1009_v49  ;;  %vm349_vm8 = vcmp.eq.f32.partialorder %v346_v54, inf  ;;  %v370_v39 = vsub.f32 %v845_v38, %v822_v29  ;;  %v371_v20 = vsub.f32 %v956_v30, %v868_v48 }
  0x68   :  { %v450_v31 = vpop.eup %449  ;;  %v313_v17 = vadd.f32 %v312_v1, %v305_v14  ;;  %v367_v13 = vsub.f32 %v365_v37, %v366_v9  ;;  %v373_v18 = vsub.f32 %v983_v8, %v859_v44  ;;  %v374_v40 = vsub.f32 %v990_v55, %v971_v45 }
  0x69   :  { %v336_v34 = vmul.f32 %v450_v31, %v1009_v49  ;;  %vm351_vm9 = vcmp.eq.f32.partialorder %v346_v54, 0.0  ;;  %v352_v24 = vand.u32 2147483648, %v346_v54  ;;  %v364_v26 = vmax.f32 %v363_v10, 0.0 }
  0x6a   :  { %v321_v21 = vadd.f32 %v320_v23, %v313_v17  ;;  %v381_v28 = vmax.f32 %v845_v38, %v983_v8  ;;  %v382_v35 = vmin.f32 %v822_v29, %v859_v44  ;;  %vm418_vm10 = vcmp.lt.s32.totalorder %v1026_v12, 8 }
  0x6b   :  { %v452_v41 = vpop.eup %451  ;;  %v338_v27 = vsel %vm337_vm6, %v1009_v49, %v336_v34  ;;  %v384_v2 = vmax.f32 %v956_v30, %v990_v55  ;;  %v385_v33 = vmin.f32 %v868_v48, %v971_v45  ;;  %v368_v47 = vmax.f32 %v367_v13, 0.0 }
  0x6c   :  { %v329_v4 = vadd.f32 %v328_v15, %v321_v21  ;;  %v348_v32 = vmul.f32 %v452_v41, %v346_v54  ;;  %v341_v42 = vsel %vm339_vm7, %v340_v22, %v338_v27  ;;  %v372_v46 = vmul.f32 %v371_v20, %v370_v39 }
  0x6d   :  { %v375_v60 = vmul.f32 %v374_v40, %v373_v18  ;;  %v383_v8 = vsub.f32 %v381_v28, %v382_v35  ;;  %v386_v48 = vsub.f32 %v384_v2, %v385_v33  ;;  %v369_v45 = vmul.f32 %v368_v47, %v364_v26 }
  0x6e   :  { %v350_v38 = vsel %vm349_vm8, %v346_v54, %v348_v32  ;;  %v419_v29 = vsel %vm418_vm10, %v329_v4, 0.0 }
  0x6f   :  { %v353_v44 = vsel %vm351_vm9, %v352_v24, %v350_v38  ;;  %423 = vst [vmem:[%s1073_s2] sm:$0x1] %v419_v29  ;;  %v376_v55 = vadd.f32 %v375_v60, %v372_v46  ;;  %v387_v49 = vmul.f32 %v386_v48, %v383_v8 }
  0x70   :  { %v355_v30 = vmin.f32 %v341_v42, %v353_v44  ;;  %v354_v3 = vmax.f32 %v341_v42, %v353_v44 }
  0x71   :  { %v377_v50 = vsub.f32 %v376_v55, %v369_v45  ;;  %v389_v51 = vadd.f32 1e-06, %v387_v49 }
  0x72   :  { %453 = vrcp.f32 %v355_v30 }
  0x73   :  { %v378_v53 = vadd.f32 1e-06, %v377_v50  ;;  %455 = vrcp.f32 %v389_v51  ;;  %v388_v54 = vsub.f32 %v387_v49, %v377_v50 }
  0x75   :  { %457 = vrcp.f32 %v378_v53 }
  0x7c   :  { %v454_v36 = vpop.eup %453 }
  0x7d   :  { %v357_v57 = vmul.f32 %v454_v36, %v354_v3  ;;  %v456_v7 = vpop.eup %455 }
  0x7e   :  { %v391_v56 = vmul.f32 %v456_v7, %v388_v54 }
  0x7f   :  { %v358_v5 = vmul.f32 -0.25, %v357_v57  ;;  %v458_v6 = vpop.eup %457 }
  0x80   :  { %v380_v19 = vmul.f32 %v458_v6, %v369_v45 }
  0x81   :  { %v359_v25 = vmul.f32 1.442695, %v358_v5 }
  0x82   :  { %v392_v58 = vsub.f32 %v380_v19, %v391_v56 }
  0x83   :  { %459 = vpow2.f32 %v359_v25 }
  0x8d   :  { %v460_v43 = vpop.eup %459 }
  0x8e   :  { %v393_v59 = vmul.f32 2.0, %v460_v43  ;;  %v420_v61 = vsel %vm418_vm10, %v460_v43, 0.0 }
  0x8f   :  { %425 = vst [vmem:[%s1073_s2 + $0x1] sm:$0x1] %v420_v61 }
  0x90   :  { %v444_v52 = vadd.f32 -1.0, %v393_v59 }
  0x92   :  { %v395_v16 = vmul.f32 %v444_v52, %v392_v58 }
  0x94   :  { %v421_v11 = vsel %vm418_vm10, %v395_v16, 0.0 }
  0x95   :  { %427 = vst [vmem:[%s1073_s2 + $0x2] sm:$0x1] %v421_v11 }
  0x96   :  { %432 = vsyncpa [#allocation3], 1 }
  0x97   :  { %433 = vsyncpa [#allocation5], 1 }

</bundles_post_ra>
